<compile_context>
chip_gen: v5e
topology: v5e:2x2
jax: 0.10.0
libtpu: 0.0.40
codegen_flags: <defaults>
</compile_context>

<pallas_src>
import math
import functools

import jax
import jax.numpy as jnp
from jax import lax
from jax.experimental import pallas as pl
from jax.experimental.pallas import tpu as pltpu


def gelu_tanh(x):
    # TODO(synk): torch nn.GELU() default is the exact erf formulation; Mosaic
    # has no guaranteed erf lowering, so the tanh approximation is used here
    # (and in the in-script reference) instead.
    c = math.sqrt(2.0 / math.pi)
    return 0.5 * x * (1.0 + jnp.tanh(c * (x + 0.044715 * x * x * x)))


def encoder_layer_kernel(x_q_ref, x_full_ref,
                         wq_ref, wk_ref, wv_ref, wo_ref,
                         bq_ref, bk_ref, bv_ref, bo_ref,
                         w1_ref, b1_ref, w2_ref, b2_ref,
                         g1_ref, beta1_ref, g2_ref, beta2_ref,
                         o_ref,
                         k_scr, v_scr,
                         *, num_heads, eps):
    qi = pl.program_id(1)

    xq_f32 = x_q_ref[0]                       # (tq, D) f32 (residual path)
    xq = xq_f32.astype(jnp.bfloat16)          # (tq, D) bf16 (matmul path)
    tq, d_model = xq_f32.shape

    # ---- K/V projections: once per batch element, cached in VMEM scratch ----
    @pl.when(qi == 0)
    def _():
        xf = x_full_ref[0].astype(jnp.bfloat16)   # (S, D) bf16

        def fill(h, carry):
            kh = jnp.dot(xf, wk_ref[h],
                         preferred_element_type=jnp.float32) + bk_ref[h]
            vh = jnp.dot(xf, wv_ref[h],
                         preferred_element_type=jnp.float32) + bv_ref[h]
            k_scr[h] = kh.astype(jnp.bfloat16)
            v_scr[h] = vh.astype(jnp.bfloat16)
            return carry

        lax.fori_loop(0, num_heads, fill, 0, unroll=True)

    # ---- per-head attention with the output projection fused in ----
    contract_last = (((1,), (1,)), ((), ()))  # Q @ K^T without materializing K.T

    def head_body(h, acc):
        # wq / bq are pre-scaled by 1/sqrt(d_k) on the host.
        qh = jnp.dot(xq, wq_ref[h],
                     preferred_element_type=jnp.float32) + bq_ref[h]   # (tq, d_k)
        kh = k_scr[h]                                                   # (S, d_k) bf16
        vh = v_scr[h]
        # TODO(synk): optional `mask` argument of the PyTorch module is not
        # wired in (module default mask=None).
        s = lax.dot_general(qh.astype(jnp.bfloat16), kh, contract_last,
                            preferred_element_type=jnp.float32)        # (tq, S)
        s = s - jnp.max(s, axis=-1, keepdims=True)
        p = jnp.exp(s)
        p = p * pl.reciprocal(jnp.sum(p, axis=-1, keepdims=True), approx=True)
        ctx = jnp.dot(p.astype(jnp.bfloat16), vh,
                      preferred_element_type=jnp.float32)               # (tq, d_k)
        return acc + jnp.dot(ctx.astype(jnp.bfloat16), wo_ref[h],
                             preferred_element_type=jnp.float32)        # (tq, D)

    attn = lax.fori_loop(0, num_heads, head_body,
                         jnp.zeros((tq, d_model), jnp.float32), unroll=True)
    attn_out = attn + bo_ref[...]

    # TODO(synk): nn.Dropout is the identity here (inference / eval mode).
    h1 = xq_f32 + attn_out
    mu1 = jnp.mean(h1, axis=-1, keepdims=True)
    var1 = jnp.mean(jnp.square(h1 - mu1), axis=-1, keepdims=True)
    h1n = (h1 - mu1) * lax.rsqrt(var1 + eps) * g1_ref[...] + beta1_ref[...]

    # ---- position-wise feed-forward (bf16 matmuls, f32 accumulation) ----
    f = jnp.dot(h1n.astype(jnp.bfloat16), w1_ref[...],
                preferred_element_type=jnp.float32) + b1_ref[...]
    f = gelu_tanh(f)
    f = jnp.dot(f.astype(jnp.bfloat16), w2_ref[...],
                preferred_element_type=jnp.float32) + b2_ref[...]

    h2 = h1n + f
    mu2 = jnp.mean(h2, axis=-1, keepdims=True)
    var2 = jnp.mean(jnp.square(h2 - mu2), axis=-1, keepdims=True)
    o_ref[0] = ((h2 - mu2) * lax.rsqrt(var2 + eps) * g2_ref[...]
                + beta2_ref[...]).astype(o_ref.dtype)


def prepare_params(params, d_model, num_heads):
    """One-time weight prep: (in, out) layout, head-major slabs, bf16 weights,
    and 1/sqrt(d_k) folded into W_q / b_q."""
    d_k = d_model // num_heads
    scale = 1.0 / math.sqrt(d_k)
    bf16 = jnp.bfloat16

    def head_major_in(w):   # torch (out, in) -> (H, D_in, d_k)
        return jnp.transpose(w.T.reshape(d_model, num_heads, d_k), (1, 0, 2))

    def head_major_out(w):  # torch (out, in) -> (H, d_k, D_out)
        return w.T.reshape(num_heads, d_k, d_model)

    return {
        "wq": (head_major_in(params["wq"]) * scale).astype(bf16),
        "wk": head_major_in(params["wk"]).astype(bf16),
        "wv": head_major_in(params["wv"]).astype(bf16),
        "wo": head_major_out(params["wo"]).astype(bf16),
        "bq": (params["bq"] * scale).reshape(num_heads, 1, d_k),
        "bk": params["bk"].reshape(num_heads, 1, d_k),
        "bv": params["bv"].reshape(num_heads, 1, d_k),
        "bo": params["bo"].reshape(1, d_model),
        "w1": params["w1"].T.astype(bf16), "b1": params["b1"].reshape(1, -1),
        "w2": params["w2"].T.astype(bf16), "b2": params["b2"].reshape(1, d_model),
        "g1": params["g1"].reshape(1, d_model),
        "beta1": params["beta1"].reshape(1, d_model),
        "g2": params["g2"].reshape(1, d_model),
        "beta2": params["beta2"].reshape(1, d_model),
    }


def _vmem_limit_bytes(S, D, d_ff, H, d_k, q_block):
    bf16, f32 = 2, 4
    weights = (4 * D * D + 2 * D * d_ff) * bf16
    biases = (3 * H * d_k + 5 * D + d_ff) * f32
    x_blocks = (q_block * D + S * D) * f32
    out_block = q_block * D * f32
    kv_scratch = 2 * H * S * d_k * bf16
    live_compute = (q_block * S + q_block * d_ff + 6 * q_block * D) * f32
    est = 2 * (weights + biases + x_blocks + out_block) + kv_scratch + live_compute
    est = int(est * 1.5) + (4 << 20)               # headroom
    return max(32 << 20, min(est, 100 << 20))


def encoder_layer_forward(x, prepped, *, num_heads, q_block=None, eps=1e-5):
    B, S, D = x.shape
    d_ff = prepped["w1"].shape[1]
    d_k = D // num_heads

    if q_block is None:
        q_block = S
    assert S % q_block == 0 and (q_block == S or q_block % 8 == 0)
    n_q = S // q_block

    kernel = functools.partial(encoder_layer_kernel,
                               num_heads=num_heads, eps=eps)

    xq_spec = pl.BlockSpec((1, q_block, D), lambda b, q: (b, q, 0))
    xf_spec = pl.BlockSpec((1, S, D), lambda b, q: (b, 0, 0))
    out_spec = pl.BlockSpec((1, q_block, D), lambda b, q: (b, q, 0))
    # TODO(synk): if D < 128 in a real deployment, fold (S, D) into a lane-dense
    # 2-D slab (or pad D to 128) so output stores are not masked vst.msk.

    def full(shape):
        return pl.BlockSpec(shape, lambda b, q: (0,) * len(shape))
    # TODO(synk): weight/bias blocks are grid-invariant; single-buffer them
    # (pipeline_mode=pl.Buffered(1)) to halve their VMEM footprint on v7x once
    # that path is validated.

    wqkv_spec = full((num_heads, D, d_k))
    wo_spec = full((num_heads, d_k, D))
    bqkv_spec = full((num_heads, 1, d_k))
    bd_spec = full((1, D))
    df_spec = full((D, d_ff))
    fd_spec = full((d_ff, D))
    bf_spec = full((1, d_ff))

    flops = int(2 * B * S * D * D * 4                # Q/K/V/O projections
                + 2 * B * S * S * D * 2              # scores + P@V (all heads)
                + 2 * B * S * D * d_ff * 2)          # FFN
    transcendentals = int(B * num_heads * S * S + B * S * d_ff)
    bytes_accessed = int(3 * B * S * D * 4           # x (2 views) + output
                         + (4 * D * D + 2 * D * d_ff) * 2)  # bf16 weights
    cost = pl.CostEstimate(flops=flops, transcendentals=transcendentals,
                           bytes_accessed=bytes_accessed)

    # TODO(synk): for B == 1 on v7x, make the q axis "parallel" (dropping the
    # cached-K/V scratch) so both TensorCores are fed; and for very long S, use
    # flash-style online softmax over K/V blocks instead of (q_block, S) scores.
    return pl.pallas_call(
        kernel,
        out_shape=jax.ShapeDtypeStruct((B, S, D), x.dtype),
        grid_spec=pltpu.PrefetchScalarGridSpec(
            num_scalar_prefetch=0,
            grid=(B, n_q),
            in_specs=[xq_spec, xf_spec,
                      wqkv_spec, wqkv_spec, wqkv_spec, wo_spec,   # wq wk wv wo
                      bqkv_spec, bqkv_spec, bqkv_spec, bd_spec,   # bq bk bv bo
                      df_spec, bf_spec, fd_spec, bd_spec,         # w1 b1 w2 b2
                      bd_spec, bd_spec, bd_spec, bd_spec],        # g1 beta1 g2 beta2
            out_specs=out_spec,
            scratch_shapes=[pltpu.VMEM((num_heads, S, d_k), jnp.bfloat16),
                            pltpu.VMEM((num_heads, S, d_k), jnp.bfloat16)]),
        compiler_params=pltpu.CompilerParams(
            dimension_semantics=("parallel", "arbitrary"),
            vmem_limit_bytes=_vmem_limit_bytes(S, D, d_ff, num_heads, d_k, q_block)),
        cost_estimate=cost,
    )(x, x,
      prepped["wq"], prepped["wk"], prepped["wv"], prepped["wo"],
      prepped["bq"], prepped["bk"], prepped["bv"], prepped["bo"],
      prepped["w1"], prepped["b1"], prepped["w2"], prepped["b2"],
      prepped["g1"], prepped["beta1"], prepped["g2"], prepped["beta2"])


def encoder_layer_reference(x, params, *, num_heads, eps=1e-5):
    """Pure-JAX f32 reference matching the PyTorch EncoderLayer (eval mode)."""
    B, S, D = x.shape
    d_k = D // num_heads

    def lin(v, w, b):
        return jnp.einsum("bsd,od->bso", v, w) + b

    Qp = lin(x, params["wq"], params["bq"]).reshape(B, S, num_heads, d_k).transpose(0, 2, 1, 3)
    Kp = lin(x, params["wk"], params["bk"]).reshape(B, S, num_heads, d_k).transpose(0, 2, 1, 3)
    Vp = lin(x, params["wv"], params["bv"]).reshape(B, S, num_heads, d_k).transpose(0, 2, 1, 3)
    scores = jnp.einsum("bhqd,bhkd->bhqk", Qp, Kp) / math.sqrt(d_k)
    w = jax.nn.softmax(scores, axis=-1)
    attn = jnp.einsum("bhqk,bhkd->bhqd", w, Vp).transpose(0, 2, 1, 3).reshape(B, S, D)
    attn_out = lin(attn, params["wo"], params["bo"])

    def layer_norm(v, g, b):
        mu = jnp.mean(v, axis=-1, keepdims=True)
        var = jnp.mean(jnp.square(v - mu), axis=-1, keepdims=True)
        return (v - mu) / jnp.sqrt(var + eps) * g + b

    h1 = layer_norm(x + attn_out, params["g1"], params["beta1"])
    ff = lin(gelu_tanh(lin(h1, params["w1"], params["b1"])),
             params["w2"], params["b2"])
    return layer_norm(h1 + ff, params["g2"], params["beta2"])


def init_params(key, d_model, d_ff):
    ks = jax.random.split(key, 16)
    b_model = 1.0 / math.sqrt(d_model)
    b_ff = 1.0 / math.sqrt(d_ff)

    def u(k, shape, bound):
        return jax.random.uniform(k, shape, jnp.float32, -bound, bound)

    return {
        "wq": u(ks[0], (d_model, d_model), b_model), "bq": u(ks[1], (d_model,), b_model),
        "wk": u(ks[2], (d_model, d_model), b_model), "bk": u(ks[3], (d_model,), b_model),
        "wv": u(ks[4], (d_model, d_model), b_model), "bv": u(ks[5], (d_model,), b_model),
        "wo": u(ks[6], (d_model, d_model), b_model), "bo": u(ks[7], (d_model,), b_model),
        "w1": u(ks[8], (d_ff, d_model), b_model), "b1": u(ks[9], (d_ff,), b_model),
        "w2": u(ks[10], (d_model, d_ff), b_ff), "b2": u(ks[11], (d_model,), b_ff),
        "g1": 1.0 + 0.1 * jax.random.normal(ks[12], (d_model,), jnp.float32),
        "beta1": 0.1 * jax.random.normal(ks[13], (d_model,), jnp.float32),
        "g2": 1.0 + 0.1 * jax.random.normal(ks[14], (d_model,), jnp.float32),
        "beta2": 0.1 * jax.random.normal(ks[15], (d_model,), jnp.float32),
    }


if __name__ == "__main__":
    batch, seq, d_model, num_heads, d_ff = 2, 16, 32, 4, 64
    q_block = 8   # exercises the seq-tiled path (grid = (batch, seq // q_block))

    key = jax.random.PRNGKey(0)
    kx, kp = jax.random.split(key)
    x = jax.random.normal(kx, (batch, seq, d_model), jnp.float32)
    params = init_params(kp, d_model, d_ff)

    # One-time parameter prep (head-major bf16 slabs, scale folding).
    prepped = prepare_params(params, d_model, num_heads)

    out = encoder_layer_forward(x, prepped, num_heads=num_heads, q_block=q_block)
    out = jax.block_until_ready(out)

    ref = encoder_layer_reference(x, params, num_heads=num_heads)
    assert out.shape == (batch, seq, d_model)
    err = float(jnp.max(jnp.abs(out - ref)))
    # bf16 matmuls (f32 accumulation) compared against an all-f32 reference.
    assert err < 5e-2, f"max abs diff {err}"

    print("KERNEL_OK")
</pallas_src>

<mosaic_0001>
module attributes {stable_mosaic.version = 11 : i64} {
  func.func @encoder_layer_kernel(%arg0: i32, %arg1: i32, %arg2: memref<1x8x32xf32, #tpu.memory_space<vmem>>, %arg3: memref<1x16x32xf32, #tpu.memory_space<vmem>>, %arg4: memref<4x32x8xbf16, #tpu.memory_space<vmem>>, %arg5: memref<4x32x8xbf16, #tpu.memory_space<vmem>>, %arg6: memref<4x32x8xbf16, #tpu.memory_space<vmem>>, %arg7: memref<4x8x32xbf16, #tpu.memory_space<vmem>>, %arg8: memref<4x1x8xf32, #tpu.memory_space<vmem>>, %arg9: memref<4x1x8xf32, #tpu.memory_space<vmem>>, %arg10: memref<4x1x8xf32, #tpu.memory_space<vmem>>, %arg11: memref<1x32xf32, #tpu.memory_space<vmem>>, %arg12: memref<32x64xbf16, #tpu.memory_space<vmem>>, %arg13: memref<1x64xf32, #tpu.memory_space<vmem>>, %arg14: memref<64x32xbf16, #tpu.memory_space<vmem>>, %arg15: memref<1x32xf32, #tpu.memory_space<vmem>>, %arg16: memref<1x32xf32, #tpu.memory_space<vmem>>, %arg17: memref<1x32xf32, #tpu.memory_space<vmem>>, %arg18: memref<1x32xf32, #tpu.memory_space<vmem>>, %arg19: memref<1x32xf32, #tpu.memory_space<vmem>>, %arg20: memref<1x8x32xf32, #tpu.memory_space<vmem>>, %arg21: memref<4x16x8xbf16, #tpu.memory_space<vmem>>, %arg22: memref<4x16x8xbf16, #tpu.memory_space<vmem>>) attributes {dimension_semantics = [#tpu.dimension_semantics<parallel>, #tpu.dimension_semantics<arbitrary>], iteration_bounds = array<i64: 2, 2>, scalar_prefetch = 0 : i64, scratch_operands = 2 : i64, tpu.core_type = #tpu.core_type<tc>, window_params = [{transform_indices = @transform_0, window_bounds = array<i64: 1, 8, 32>}, {transform_indices = @transform_1, window_bounds = array<i64: 1, 16, 32>}, {pipeline_mode = #tpu.pipeline_mode<synchronous>, transform_indices = @transform_2, window_bounds = array<i64: 4, 32, 8>}, {pipeline_mode = #tpu.pipeline_mode<synchronous>, transform_indices = @transform_3, window_bounds = array<i64: 4, 32, 8>}, {pipeline_mode = #tpu.pipeline_mode<synchronous>, transform_indices = @transform_4, window_bounds = array<i64: 4, 32, 8>}, {pipeline_mode = #tpu.pipeline_mode<synchronous>, transform_indices = @transform_5, window_bounds = array<i64: 4, 8, 32>}, {pipeline_mode = #tpu.pipeline_mode<synchronous>, transform_indices = @transform_6, window_bounds = array<i64: 4, 1, 8>}, {pipeline_mode = #tpu.pipeline_mode<synchronous>, transform_indices = @transform_7, window_bounds = array<i64: 4, 1, 8>}, {pipeline_mode = #tpu.pipeline_mode<synchronous>, transform_indices = @transform_8, window_bounds = array<i64: 4, 1, 8>}, {pipeline_mode = #tpu.pipeline_mode<synchronous>, transform_indices = @transform_9, window_bounds = array<i64: 1, 32>}, {pipeline_mode = #tpu.pipeline_mode<synchronous>, transform_indices = @transform_10, window_bounds = array<i64: 32, 64>}, {pipeline_mode = #tpu.pipeline_mode<synchronous>, transform_indices = @transform_11, window_bounds = array<i64: 1, 64>}, {pipeline_mode = #tpu.pipeline_mode<synchronous>, transform_indices = @transform_12, window_bounds = array<i64: 64, 32>}, {pipeline_mode = #tpu.pipeline_mode<synchronous>, transform_indices = @transform_13, window_bounds = array<i64: 1, 32>}, {pipeline_mode = #tpu.pipeline_mode<synchronous>, transform_indices = @transform_14, window_bounds = array<i64: 1, 32>}, {pipeline_mode = #tpu.pipeline_mode<synchronous>, transform_indices = @transform_15, window_bounds = array<i64: 1, 32>}, {pipeline_mode = #tpu.pipeline_mode<synchronous>, transform_indices = @transform_16, window_bounds = array<i64: 1, 32>}, {pipeline_mode = #tpu.pipeline_mode<synchronous>, transform_indices = @transform_17, window_bounds = array<i64: 1, 32>}, {transform_indices = @transform_18, window_bounds = array<i64: 1, 8, 32>}]} {
    %c0 = arith.constant 0 : index
    %c0_0 = arith.constant 0 : index
    %c0_1 = arith.constant 0 : index
    %0 = vector.load %arg2[%c0, %c0_0, %c0_1] : memref<1x8x32xf32, #tpu.memory_space<vmem>>, vector<1x8x32xf32>
    %1 = vector.shape_cast %0 : vector<1x8x32xf32> to vector<8x32xf32>
    %2 = arith.truncf %1 : vector<8x32xf32> to vector<8x32xbf16>
    %c0_i32 = arith.constant 0 : i32
    %3 = arith.cmpi eq, %arg1, %c0_i32 : i32
    %4 = arith.extui %3 : i1 to i32
    %c0_i32_2 = arith.constant 0 : i32
    %5 = arith.cmpi ne, %4, %c0_i32_2 : i32
    scf.if %5 {
      %c0_105 = arith.constant 0 : index
      %c0_106 = arith.constant 0 : index
      %c0_107 = arith.constant 0 : index
      %228 = vector.load %arg3[%c0_105, %c0_106, %c0_107] : memref<1x16x32xf32, #tpu.memory_space<vmem>>, vector<1x16x32xf32>
      %229 = vector.shape_cast %228 : vector<1x16x32xf32> to vector<16x32xf32>
      %230 = arith.truncf %229 : vector<16x32xf32> to vector<16x32xbf16>
      %c0_i32_108 = arith.constant 0 : i32
      %231 = arith.index_cast %c0_i32_108 : i32 to index
      %c0_109 = arith.constant 0 : index
      %c0_110 = arith.constant 0 : index
      %232 = vector.load %arg5[%231, %c0_109, %c0_110] : memref<4x32x8xbf16, #tpu.memory_space<vmem>>, vector<1x32x8xbf16>
      %233 = vector.shape_cast %232 : vector<1x32x8xbf16> to vector<32x8xbf16>
      %cst_111 = arith.constant dense<0.000000e+00> : vector<16x8xf32>
      %234 = tpu.matmul %230, %233, %cst_111 {dimension_numbers = #tpu.dot_dimension_numbers<[1], [0], [0], [1], [0, 0, 1, 1], [], []>} : vector<16x32xbf16>, vector<32x8xbf16>, vector<16x8xf32> -> vector<16x8xf32>
      %235 = arith.index_cast %c0_i32_108 : i32 to index
      %c0_112 = arith.constant 0 : index
      %c0_113 = arith.constant 0 : index
      %236 = vector.load %arg9[%235, %c0_112, %c0_113] : memref<4x1x8xf32, #tpu.memory_space<vmem>>, vector<1x1x8xf32>
      %237 = vector.shape_cast %236 : vector<1x1x8xf32> to vector<1x8xf32>
      %238 = vector.broadcast %237 : vector<1x8xf32> to vector<16x8xf32>
      %239 = arith.addf %234, %238 : vector<16x8xf32>
      %240 = arith.index_cast %c0_i32_108 : i32 to index
      %c0_114 = arith.constant 0 : index
      %c0_115 = arith.constant 0 : index
      %241 = vector.load %arg6[%240, %c0_114, %c0_115] : memref<4x32x8xbf16, #tpu.memory_space<vmem>>, vector<1x32x8xbf16>
      %242 = vector.shape_cast %241 : vector<1x32x8xbf16> to vector<32x8xbf16>
      %cst_116 = arith.constant dense<0.000000e+00> : vector<16x8xf32>
      %243 = tpu.matmul %230, %242, %cst_116 {dimension_numbers = #tpu.dot_dimension_numbers<[1], [0], [0], [1], [0, 0, 1, 1], [], []>} : vector<16x32xbf16>, vector<32x8xbf16>, vector<16x8xf32> -> vector<16x8xf32>
      %244 = arith.index_cast %c0_i32_108 : i32 to index
      %c0_117 = arith.constant 0 : index
      %c0_118 = arith.constant 0 : index
      %245 = vector.load %arg10[%244, %c0_117, %c0_118] : memref<4x1x8xf32, #tpu.memory_space<vmem>>, vector<1x1x8xf32>
      %246 = vector.shape_cast %245 : vector<1x1x8xf32> to vector<1x8xf32>
      %247 = vector.broadcast %246 : vector<1x8xf32> to vector<16x8xf32>
      %248 = arith.addf %243, %247 : vector<16x8xf32>
      %249 = arith.truncf %239 : vector<16x8xf32> to vector<16x8xbf16>
      %250 = arith.index_cast %c0_i32_108 : i32 to index
      %c0_119 = arith.constant 0 : index
      %c0_120 = arith.constant 0 : index
      %251 = vector.load %arg21[%250, %c0_119, %c0_120] : memref<4x16x8xbf16, #tpu.memory_space<vmem>>, vector<1x16x8xbf16>
      %252 = vector.shape_cast %251 : vector<1x16x8xbf16> to vector<16x8xbf16>
      %253 = vector.shape_cast %249 : vector<16x8xbf16> to vector<1x16x8xbf16>
      tpu.vector_store %arg21[%250, %c0_119, %c0_120], %253 {strides = array<i32>} : memref<4x16x8xbf16, #tpu.memory_space<vmem>>, vector<1x16x8xbf16>,
      %254 = arith.truncf %248 : vector<16x8xf32> to vector<16x8xbf16>
      %255 = arith.index_cast %c0_i32_108 : i32 to index
      %c0_121 = arith.constant 0 : index
      %c0_122 = arith.constant 0 : index
      %256 = vector.load %arg22[%255, %c0_121, %c0_122] : memref<4x16x8xbf16, #tpu.memory_space<vmem>>, vector<1x16x8xbf16>
      %257 = vector.shape_cast %256 : vector<1x16x8xbf16> to vector<16x8xbf16>
      %258 = vector.shape_cast %254 : vector<16x8xbf16> to vector<1x16x8xbf16>
      tpu.vector_store %arg22[%255, %c0_121, %c0_122], %258 {strides = array<i32>} : memref<4x16x8xbf16, #tpu.memory_space<vmem>>, vector<1x16x8xbf16>,
      %c1_i32_123 = arith.constant 1 : i32
      %259 = arith.index_cast %c1_i32_123 : i32 to index
      %c0_124 = arith.constant 0 : index
      %c0_125 = arith.constant 0 : index
      %260 = vector.load %arg5[%259, %c0_124, %c0_125] : memref<4x32x8xbf16, #tpu.memory_space<vmem>>, vector<1x32x8xbf16>
      %261 = vector.shape_cast %260 : vector<1x32x8xbf16> to vector<32x8xbf16>
      %cst_126 = arith.constant dense<0.000000e+00> : vector<16x8xf32>
      %262 = tpu.matmul %230, %261, %cst_126 {dimension_numbers = #tpu.dot_dimension_numbers<[1], [0], [0], [1], [0, 0, 1, 1], [], []>} : vector<16x32xbf16>, vector<32x8xbf16>, vector<16x8xf32> -> vector<16x8xf32>
      %263 = arith.index_cast %c1_i32_123 : i32 to index
      %c0_127 = arith.constant 0 : index
      %c0_128 = arith.constant 0 : index
      %264 = vector.load %arg9[%263, %c0_127, %c0_128] : memref<4x1x8xf32, #tpu.memory_space<vmem>>, vector<1x1x8xf32>
      %265 = vector.shape_cast %264 : vector<1x1x8xf32> to vector<1x8xf32>
      %266 = vector.broadcast %265 : vector<1x8xf32> to vector<16x8xf32>
      %267 = arith.addf %262, %266 : vector<16x8xf32>
      %268 = arith.index_cast %c1_i32_123 : i32 to index
      %c0_129 = arith.constant 0 : index
      %c0_130 = arith.constant 0 : index
      %269 = vector.load %arg6[%268, %c0_129, %c0_130] : memref<4x32x8xbf16, #tpu.memory_space<vmem>>, vector<1x32x8xbf16>
      %270 = vector.shape_cast %269 : vector<1x32x8xbf16> to vector<32x8xbf16>
      %cst_131 = arith.constant dense<0.000000e+00> : vector<16x8xf32>
      %271 = tpu.matmul %230, %270, %cst_131 {dimension_numbers = #tpu.dot_dimension_numbers<[1], [0], [0], [1], [0, 0, 1, 1], [], []>} : vector<16x32xbf16>, vector<32x8xbf16>, vector<16x8xf32> -> vector<16x8xf32>
      %272 = arith.index_cast %c1_i32_123 : i32 to index
      %c0_132 = arith.constant 0 : index
      %c0_133 = arith.constant 0 : index
      %273 = vector.load %arg10[%272, %c0_132, %c0_133] : memref<4x1x8xf32, #tpu.memory_space<vmem>>, vector<1x1x8xf32>
      %274 = vector.shape_cast %273 : vector<1x1x8xf32> to vector<1x8xf32>
      %275 = vector.broadcast %274 : vector<1x8xf32> to vector<16x8xf32>
      %276 = arith.addf %271, %275 : vector<16x8xf32>
      %277 = arith.truncf %267 : vector<16x8xf32> to vector<16x8xbf16>
      %278 = arith.index_cast %c1_i32_123 : i32 to index
      %c0_134 = arith.constant 0 : index
      %c0_135 = arith.constant 0 : index
      %279 = vector.load %arg21[%278, %c0_134, %c0_135] : memref<4x16x8xbf16, #tpu.memory_space<vmem>>, vector<1x16x8xbf16>
      %280 = vector.shape_cast %279 : vector<1x16x8xbf16> to vector<16x8xbf16>
      %281 = vector.shape_cast %277 : vector<16x8xbf16> to vector<1x16x8xbf16>
      tpu.vector_store %arg21[%278, %c0_134, %c0_135], %281 {strides = array<i32>} : memref<4x16x8xbf16, #tpu.memory_space<vmem>>, vector<1x16x8xbf16>,
      %282 = arith.truncf %276 : vector<16x8xf32> to vector<16x8xbf16>
      %283 = arith.index_cast %c1_i32_123 : i32 to index
      %c0_136 = arith.constant 0 : index
      %c0_137 = arith.constant 0 : index
      %284 = vector.load %arg22[%283, %c0_136, %c0_137] : memref<4x16x8xbf16, #tpu.memory_space<vmem>>, vector<1x16x8xbf16>
      %285 = vector.shape_cast %284 : vector<1x16x8xbf16> to vector<16x8xbf16>
      %286 = vector.shape_cast %282 : vector<16x8xbf16> to vector<1x16x8xbf16>
      tpu.vector_store %arg22[%283, %c0_136, %c0_137], %286 {strides = array<i32>} : memref<4x16x8xbf16, #tpu.memory_space<vmem>>, vector<1x16x8xbf16>,
      %c2_i32_138 = arith.constant 2 : i32
      %287 = arith.index_cast %c2_i32_138 : i32 to index
      %c0_139 = arith.constant 0 : index
      %c0_140 = arith.constant 0 : index
      %288 = vector.load %arg5[%287, %c0_139, %c0_140] : memref<4x32x8xbf16, #tpu.memory_space<vmem>>, vector<1x32x8xbf16>
      %289 = vector.shape_cast %288 : vector<1x32x8xbf16> to vector<32x8xbf16>
      %cst_141 = arith.constant dense<0.000000e+00> : vector<16x8xf32>
      %290 = tpu.matmul %230, %289, %cst_141 {dimension_numbers = #tpu.dot_dimension_numbers<[1], [0], [0], [1], [0, 0, 1, 1], [], []>} : vector<16x32xbf16>, vector<32x8xbf16>, vector<16x8xf32> -> vector<16x8xf32>
      %291 = arith.index_cast %c2_i32_138 : i32 to index
      %c0_142 = arith.constant 0 : index
      %c0_143 = arith.constant 0 : index
      %292 = vector.load %arg9[%291, %c0_142, %c0_143] : memref<4x1x8xf32, #tpu.memory_space<vmem>>, vector<1x1x8xf32>
      %293 = vector.shape_cast %292 : vector<1x1x8xf32> to vector<1x8xf32>
      %294 = vector.broadcast %293 : vector<1x8xf32> to vector<16x8xf32>
      %295 = arith.addf %290, %294 : vector<16x8xf32>
      %296 = arith.index_cast %c2_i32_138 : i32 to index
      %c0_144 = arith.constant 0 : index
      %c0_145 = arith.constant 0 : index
      %297 = vector.load %arg6[%296, %c0_144, %c0_145] : memref<4x32x8xbf16, #tpu.memory_space<vmem>>, vector<1x32x8xbf16>
      %298 = vector.shape_cast %297 : vector<1x32x8xbf16> to vector<32x8xbf16>
      %cst_146 = arith.constant dense<0.000000e+00> : vector<16x8xf32>
      %299 = tpu.matmul %230, %298, %cst_146 {dimension_numbers = #tpu.dot_dimension_numbers<[1], [0], [0], [1], [0, 0, 1, 1], [], []>} : vector<16x32xbf16>, vector<32x8xbf16>, vector<16x8xf32> -> vector<16x8xf32>
      %300 = arith.index_cast %c2_i32_138 : i32 to index
      %c0_147 = arith.constant 0 : index
      %c0_148 = arith.constant 0 : index
      %301 = vector.load %arg10[%300, %c0_147, %c0_148] : memref<4x1x8xf32, #tpu.memory_space<vmem>>, vector<1x1x8xf32>
      %302 = vector.shape_cast %301 : vector<1x1x8xf32> to vector<1x8xf32>
      %303 = vector.broadcast %302 : vector<1x8xf32> to vector<16x8xf32>
      %304 = arith.addf %299, %303 : vector<16x8xf32>
      %305 = arith.truncf %295 : vector<16x8xf32> to vector<16x8xbf16>
      %306 = arith.index_cast %c2_i32_138 : i32 to index
      %c0_149 = arith.constant 0 : index
      %c0_150 = arith.constant 0 : index
      %307 = vector.load %arg21[%306, %c0_149, %c0_150] : memref<4x16x8xbf16, #tpu.memory_space<vmem>>, vector<1x16x8xbf16>
      %308 = vector.shape_cast %307 : vector<1x16x8xbf16> to vector<16x8xbf16>
      %309 = vector.shape_cast %305 : vector<16x8xbf16> to vector<1x16x8xbf16>
      tpu.vector_store %arg21[%306, %c0_149, %c0_150], %309 {strides = array<i32>} : memref<4x16x8xbf16, #tpu.memory_space<vmem>>, vector<1x16x8xbf16>,
      %310 = arith.truncf %304 : vector<16x8xf32> to vector<16x8xbf16>
      %311 = arith.index_cast %c2_i32_138 : i32 to index
      %c0_151 = arith.constant 0 : index
      %c0_152 = arith.constant 0 : index
      %312 = vector.load %arg22[%311, %c0_151, %c0_152] : memref<4x16x8xbf16, #tpu.memory_space<vmem>>, vector<1x16x8xbf16>
      %313 = vector.shape_cast %312 : vector<1x16x8xbf16> to vector<16x8xbf16>
      %314 = vector.shape_cast %310 : vector<16x8xbf16> to vector<1x16x8xbf16>
      tpu.vector_store %arg22[%311, %c0_151, %c0_152], %314 {strides = array<i32>} : memref<4x16x8xbf16, #tpu.memory_space<vmem>>, vector<1x16x8xbf16>,
      %c3_i32_153 = arith.constant 3 : i32
      %315 = arith.index_cast %c3_i32_153 : i32 to index
      %c0_154 = arith.constant 0 : index
      %c0_155 = arith.constant 0 : index
      %316 = vector.load %arg5[%315, %c0_154, %c0_155] : memref<4x32x8xbf16, #tpu.memory_space<vmem>>, vector<1x32x8xbf16>
      %317 = vector.shape_cast %316 : vector<1x32x8xbf16> to vector<32x8xbf16>
      %cst_156 = arith.constant dense<0.000000e+00> : vector<16x8xf32>
      %318 = tpu.matmul %230, %317, %cst_156 {dimension_numbers = #tpu.dot_dimension_numbers<[1], [0], [0], [1], [0, 0, 1, 1], [], []>} : vector<16x32xbf16>, vector<32x8xbf16>, vector<16x8xf32> -> vector<16x8xf32>
      %319 = arith.index_cast %c3_i32_153 : i32 to index
      %c0_157 = arith.constant 0 : index
      %c0_158 = arith.constant 0 : index
      %320 = vector.load %arg9[%319, %c0_157, %c0_158] : memref<4x1x8xf32, #tpu.memory_space<vmem>>, vector<1x1x8xf32>
      %321 = vector.shape_cast %320 : vector<1x1x8xf32> to vector<1x8xf32>
      %322 = vector.broadcast %321 : vector<1x8xf32> to vector<16x8xf32>
      %323 = arith.addf %318, %322 : vector<16x8xf32>
      %324 = arith.index_cast %c3_i32_153 : i32 to index
      %c0_159 = arith.constant 0 : index
      %c0_160 = arith.constant 0 : index
      %325 = vector.load %arg6[%324, %c0_159, %c0_160] : memref<4x32x8xbf16, #tpu.memory_space<vmem>>, vector<1x32x8xbf16>
      %326 = vector.shape_cast %325 : vector<1x32x8xbf16> to vector<32x8xbf16>
      %cst_161 = arith.constant dense<0.000000e+00> : vector<16x8xf32>
      %327 = tpu.matmul %230, %326, %cst_161 {dimension_numbers = #tpu.dot_dimension_numbers<[1], [0], [0], [1], [0, 0, 1, 1], [], []>} : vector<16x32xbf16>, vector<32x8xbf16>, vector<16x8xf32> -> vector<16x8xf32>
      %328 = arith.index_cast %c3_i32_153 : i32 to index
      %c0_162 = arith.constant 0 : index
      %c0_163 = arith.constant 0 : index
      %329 = vector.load %arg10[%328, %c0_162, %c0_163] : memref<4x1x8xf32, #tpu.memory_space<vmem>>, vector<1x1x8xf32>
      %330 = vector.shape_cast %329 : vector<1x1x8xf32> to vector<1x8xf32>
      %331 = vector.broadcast %330 : vector<1x8xf32> to vector<16x8xf32>
      %332 = arith.addf %327, %331 : vector<16x8xf32>
      %333 = arith.truncf %323 : vector<16x8xf32> to vector<16x8xbf16>
      %334 = arith.index_cast %c3_i32_153 : i32 to index
      %c0_164 = arith.constant 0 : index
      %c0_165 = arith.constant 0 : index
      %335 = vector.load %arg21[%334, %c0_164, %c0_165] : memref<4x16x8xbf16, #tpu.memory_space<vmem>>, vector<1x16x8xbf16>
      %336 = vector.shape_cast %335 : vector<1x16x8xbf16> to vector<16x8xbf16>
      %337 = vector.shape_cast %333 : vector<16x8xbf16> to vector<1x16x8xbf16>
      tpu.vector_store %arg21[%334, %c0_164, %c0_165], %337 {strides = array<i32>} : memref<4x16x8xbf16, #tpu.memory_space<vmem>>, vector<1x16x8xbf16>,
      %338 = arith.truncf %332 : vector<16x8xf32> to vector<16x8xbf16>
      %339 = arith.index_cast %c3_i32_153 : i32 to index
      %c0_166 = arith.constant 0 : index
      %c0_167 = arith.constant 0 : index
      %340 = vector.load %arg22[%339, %c0_166, %c0_167] : memref<4x16x8xbf16, #tpu.memory_space<vmem>>, vector<1x16x8xbf16>
      %341 = vector.shape_cast %340 : vector<1x16x8xbf16> to vector<16x8xbf16>
      %342 = vector.shape_cast %338 : vector<16x8xbf16> to vector<1x16x8xbf16>
      tpu.vector_store %arg22[%339, %c0_166, %c0_167], %342 {strides = array<i32>} : memref<4x16x8xbf16, #tpu.memory_space<vmem>>, vector<1x16x8xbf16>,
      %c4_i32_168 = arith.constant 4 : i32
    } else {
    }
    %cst = arith.constant 0.000000e+00 : f32
    %6 = vector.broadcast %cst : f32 to vector<8x32xf32>
    %c0_i32_3 = arith.constant 0 : i32
    %7 = arith.index_cast %c0_i32_3 : i32 to index
    %c0_4 = arith.constant 0 : index
    %c0_5 = arith.constant 0 : index
    %8 = vector.load %arg4[%7, %c0_4, %c0_5] : memref<4x32x8xbf16, #tpu.memory_space<vmem>>, vector<1x32x8xbf16>
    %9 = vector.shape_cast %8 : vector<1x32x8xbf16> to vector<32x8xbf16>
    %cst_6 = arith.constant dense<0.000000e+00> : vector<8x8xf32>
    %10 = tpu.matmul %2, %9, %cst_6 {dimension_numbers = #tpu.dot_dimension_numbers<[1], [0], [0], [1], [0, 0, 1, 1], [], []>} : vector<8x32xbf16>, vector<32x8xbf16>, vector<8x8xf32> -> vector<8x8xf32>
    %11 = arith.index_cast %c0_i32_3 : i32 to index
    %c0_7 = arith.constant 0 : index
    %c0_8 = arith.constant 0 : index
    %12 = vector.load %arg8[%11, %c0_7, %c0_8] : memref<4x1x8xf32, #tpu.memory_space<vmem>>, vector<1x1x8xf32>
    %13 = vector.shape_cast %12 : vector<1x1x8xf32> to vector<1x8xf32>
    %14 = vector.broadcast %13 : vector<1x8xf32> to vector<8x8xf32>
    %15 = arith.addf %10, %14 : vector<8x8xf32>
    %16 = arith.index_cast %c0_i32_3 : i32 to index
    %c0_9 = arith.constant 0 : index
    %c0_10 = arith.constant 0 : index
    %17 = vector.load %arg21[%16, %c0_9, %c0_10] : memref<4x16x8xbf16, #tpu.memory_space<vmem>>, vector<1x16x8xbf16>
    %18 = vector.shape_cast %17 : vector<1x16x8xbf16> to vector<16x8xbf16>
    %19 = arith.index_cast %c0_i32_3 : i32 to index
    %c0_11 = arith.constant 0 : index
    %c0_12 = arith.constant 0 : index
    %20 = vector.load %arg22[%19, %c0_11, %c0_12] : memref<4x16x8xbf16, #tpu.memory_space<vmem>>, vector<1x16x8xbf16>
    %21 = vector.shape_cast %20 : vector<1x16x8xbf16> to vector<16x8xbf16>
    %22 = arith.truncf %15 : vector<8x8xf32> to vector<8x8xbf16>
    %cst_13 = arith.constant dense<0.000000e+00> : vector<8x16xf32>
    %23 = tpu.matmul %22, %18, %cst_13 {dimension_numbers = #tpu.dot_dimension_numbers<[1], [1], [0], [0], [0, 0, 1, 0], [], []>} : vector<8x8xbf16>, vector<16x8xbf16>, vector<8x16xf32> -> vector<8x16xf32>
    %cst_14 = arith.constant dense<0xFF800000> : vector<8xf32>
    %24 = vector.multi_reduction <maximumf>, %23, %cst_14 [1] : vector<8x16xf32> to vector<8xf32>
    %25 = vector.shape_cast %24 : vector<8xf32> to vector<8x1xf32>
    %26 = vector.broadcast %25 : vector<8x1xf32> to vector<8x16xf32>
    %27 = arith.subf %23, %26 : vector<8x16xf32>
    %28 = math.exp %27 : vector<8x16xf32>
    %cst_15 = arith.constant dense<0.000000e+00> : vector<8xf32>
    %29 = vector.multi_reduction <add>, %28, %cst_15 [1] : vector<8x16xf32> to vector<8xf32>
    %30 = vector.shape_cast %29 : vector<8xf32> to vector<8x1xf32>
    %31 = tpu.reciprocal %30 {approx = true} : vector<8x1xf32> -> vector<8x1xf32>
    %32 = vector.broadcast %31 : vector<8x1xf32> to vector<8x16xf32>
    %33 = arith.mulf %28, %32 : vector<8x16xf32>
    %34 = arith.truncf %33 : vector<8x16xf32> to vector<8x16xbf16>
    %cst_16 = arith.constant dense<0.000000e+00> : vector<8x8xf32>
    %35 = tpu.matmul %34, %21, %cst_16 {dimension_numbers = #tpu.dot_dimension_numbers<[1], [0], [0], [1], [0, 0, 1, 1], [], []>} : vector<8x16xbf16>, vector<16x8xbf16>, vector<8x8xf32> -> vector<8x8xf32>
    %36 = arith.truncf %35 : vector<8x8xf32> to vector<8x8xbf16>
    %37 = arith.index_cast %c0_i32_3 : i32 to index
    %c0_17 = arith.constant 0 : index
    %c0_18 = arith.constant 0 : index
    %38 = vector.load %arg7[%37, %c0_17, %c0_18] : memref<4x8x32xbf16, #tpu.memory_space<vmem>>, vector<1x8x32xbf16>
    %39 = vector.shape_cast %38 : vector<1x8x32xbf16> to vector<8x32xbf16>
    %cst_19 = arith.constant dense<0.000000e+00> : vector<8x32xf32>
    %40 = tpu.matmul %36, %39, %cst_19 {dimension_numbers = #tpu.dot_dimension_numbers<[1], [0], [0], [1], [0, 0, 1, 1], [], []>} : vector<8x8xbf16>, vector<8x32xbf16>, vector<8x32xf32> -> vector<8x32xf32>
    %41 = arith.addf %6, %40 : vector<8x32xf32>
    %c1_i32 = arith.constant 1 : i32
    %42 = arith.index_cast %c1_i32 : i32 to index
    %c0_20 = arith.constant 0 : index
    %c0_21 = arith.constant 0 : index
    %43 = vector.load %arg4[%42, %c0_20, %c0_21] : memref<4x32x8xbf16, #tpu.memory_space<vmem>>, vector<1x32x8xbf16>
    %44 = vector.shape_cast %43 : vector<1x32x8xbf16> to vector<32x8xbf16>
    %cst_22 = arith.constant dense<0.000000e+00> : vector<8x8xf32>
    %45 = tpu.matmul %2, %44, %cst_22 {dimension_numbers = #tpu.dot_dimension_numbers<[1], [0], [0], [1], [0, 0, 1, 1], [], []>} : vector<8x32xbf16>, vector<32x8xbf16>, vector<8x8xf32> -> vector<8x8xf32>
    %46 = arith.index_cast %c1_i32 : i32 to index
    %c0_23 = arith.constant 0 : index
    %c0_24 = arith.constant 0 : index
    %47 = vector.load %arg8[%46, %c0_23, %c0_24] : memref<4x1x8xf32, #tpu.memory_space<vmem>>, vector<1x1x8xf32>
    %48 = vector.shape_cast %47 : vector<1x1x8xf32> to vector<1x8xf32>
    %49 = vector.broadcast %48 : vector<1x8xf32> to vector<8x8xf32>
    %50 = arith.addf %45, %49 : vector<8x8xf32>
    %51 = arith.index_cast %c1_i32 : i32 to index
    %c0_25 = arith.constant 0 : index
    %c0_26 = arith.constant 0 : index
    %52 = vector.load %arg21[%51, %c0_25, %c0_26] : memref<4x16x8xbf16, #tpu.memory_space<vmem>>, vector<1x16x8xbf16>
    %53 = vector.shape_cast %52 : vector<1x16x8xbf16> to vector<16x8xbf16>
    %54 = arith.index_cast %c1_i32 : i32 to index
    %c0_27 = arith.constant 0 : index
    %c0_28 = arith.constant 0 : index
    %55 = vector.load %arg22[%54, %c0_27, %c0_28] : memref<4x16x8xbf16, #tpu.memory_space<vmem>>, vector<1x16x8xbf16>
    %56 = vector.shape_cast %55 : vector<1x16x8xbf16> to vector<16x8xbf16>
    %57 = arith.truncf %50 : vector<8x8xf32> to vector<8x8xbf16>
    %cst_29 = arith.constant dense<0.000000e+00> : vector<8x16xf32>
    %58 = tpu.matmul %57, %53, %cst_29 {dimension_numbers = #tpu.dot_dimension_numbers<[1], [1], [0], [0], [0, 0, 1, 0], [], []>} : vector<8x8xbf16>, vector<16x8xbf16>, vector<8x16xf32> -> vector<8x16xf32>
    %cst_30 = arith.constant dense<0xFF800000> : vector<8xf32>
    %59 = vector.multi_reduction <maximumf>, %58, %cst_30 [1] : vector<8x16xf32> to vector<8xf32>
    %60 = vector.shape_cast %59 : vector<8xf32> to vector<8x1xf32>
    %61 = vector.broadcast %60 : vector<8x1xf32> to vector<8x16xf32>
    %62 = arith.subf %58, %61 : vector<8x16xf32>
    %63 = math.exp %62 : vector<8x16xf32>
    %cst_31 = arith.constant dense<0.000000e+00> : vector<8xf32>
    %64 = vector.multi_reduction <add>, %63, %cst_31 [1] : vector<8x16xf32> to vector<8xf32>
    %65 = vector.shape_cast %64 : vector<8xf32> to vector<8x1xf32>
    %66 = tpu.reciprocal %65 {approx = true} : vector<8x1xf32> -> vector<8x1xf32>
    %67 = vector.broadcast %66 : vector<8x1xf32> to vector<8x16xf32>
    %68 = arith.mulf %63, %67 : vector<8x16xf32>
    %69 = arith.truncf %68 : vector<8x16xf32> to vector<8x16xbf16>
    %cst_32 = arith.constant dense<0.000000e+00> : vector<8x8xf32>
    %70 = tpu.matmul %69, %56, %cst_32 {dimension_numbers = #tpu.dot_dimension_numbers<[1], [0], [0], [1], [0, 0, 1, 1], [], []>} : vector<8x16xbf16>, vector<16x8xbf16>, vector<8x8xf32> -> vector<8x8xf32>
    %71 = arith.truncf %70 : vector<8x8xf32> to vector<8x8xbf16>
    %72 = arith.index_cast %c1_i32 : i32 to index
    %c0_33 = arith.constant 0 : index
    %c0_34 = arith.constant 0 : index
    %73 = vector.load %arg7[%72, %c0_33, %c0_34] : memref<4x8x32xbf16, #tpu.memory_space<vmem>>, vector<1x8x32xbf16>
    %74 = vector.shape_cast %73 : vector<1x8x32xbf16> to vector<8x32xbf16>
    %cst_35 = arith.constant dense<0.000000e+00> : vector<8x32xf32>
    %75 = tpu.matmul %71, %74, %cst_35 {dimension_numbers = #tpu.dot_dimension_numbers<[1], [0], [0], [1], [0, 0, 1, 1], [], []>} : vector<8x8xbf16>, vector<8x32xbf16>, vector<8x32xf32> -> vector<8x32xf32>
    %76 = arith.addf %41, %75 : vector<8x32xf32>
    %c2_i32 = arith.constant 2 : i32
    %77 = arith.index_cast %c2_i32 : i32 to index
    %c0_36 = arith.constant 0 : index
    %c0_37 = arith.constant 0 : index
    %78 = vector.load %arg4[%77, %c0_36, %c0_37] : memref<4x32x8xbf16, #tpu.memory_space<vmem>>, vector<1x32x8xbf16>
    %79 = vector.shape_cast %78 : vector<1x32x8xbf16> to vector<32x8xbf16>
    %cst_38 = arith.constant dense<0.000000e+00> : vector<8x8xf32>
    %80 = tpu.matmul %2, %79, %cst_38 {dimension_numbers = #tpu.dot_dimension_numbers<[1], [0], [0], [1], [0, 0, 1, 1], [], []>} : vector<8x32xbf16>, vector<32x8xbf16>, vector<8x8xf32> -> vector<8x8xf32>
    %81 = arith.index_cast %c2_i32 : i32 to index
    %c0_39 = arith.constant 0 : index
    %c0_40 = arith.constant 0 : index
    %82 = vector.load %arg8[%81, %c0_39, %c0_40] : memref<4x1x8xf32, #tpu.memory_space<vmem>>, vector<1x1x8xf32>
    %83 = vector.shape_cast %82 : vector<1x1x8xf32> to vector<1x8xf32>
    %84 = vector.broadcast %83 : vector<1x8xf32> to vector<8x8xf32>
    %85 = arith.addf %80, %84 : vector<8x8xf32>
    %86 = arith.index_cast %c2_i32 : i32 to index
    %c0_41 = arith.constant 0 : index
    %c0_42 = arith.constant 0 : index
    %87 = vector.load %arg21[%86, %c0_41, %c0_42] : memref<4x16x8xbf16, #tpu.memory_space<vmem>>, vector<1x16x8xbf16>
    %88 = vector.shape_cast %87 : vector<1x16x8xbf16> to vector<16x8xbf16>
    %89 = arith.index_cast %c2_i32 : i32 to index
    %c0_43 = arith.constant 0 : index
    %c0_44 = arith.constant 0 : index
    %90 = vector.load %arg22[%89, %c0_43, %c0_44] : memref<4x16x8xbf16, #tpu.memory_space<vmem>>, vector<1x16x8xbf16>
    %91 = vector.shape_cast %90 : vector<1x16x8xbf16> to vector<16x8xbf16>
    %92 = arith.truncf %85 : vector<8x8xf32> to vector<8x8xbf16>
    %cst_45 = arith.constant dense<0.000000e+00> : vector<8x16xf32>
    %93 = tpu.matmul %92, %88, %cst_45 {dimension_numbers = #tpu.dot_dimension_numbers<[1], [1], [0], [0], [0, 0, 1, 0], [], []>} : vector<8x8xbf16>, vector<16x8xbf16>, vector<8x16xf32> -> vector<8x16xf32>
    %cst_46 = arith.constant dense<0xFF800000> : vector<8xf32>
    %94 = vector.multi_reduction <maximumf>, %93, %cst_46 [1] : vector<8x16xf32> to vector<8xf32>
    %95 = vector.shape_cast %94 : vector<8xf32> to vector<8x1xf32>
    %96 = vector.broadcast %95 : vector<8x1xf32> to vector<8x16xf32>
    %97 = arith.subf %93, %96 : vector<8x16xf32>
    %98 = math.exp %97 : vector<8x16xf32>
    %cst_47 = arith.constant dense<0.000000e+00> : vector<8xf32>
    %99 = vector.multi_reduction <add>, %98, %cst_47 [1] : vector<8x16xf32> to vector<8xf32>
    %100 = vector.shape_cast %99 : vector<8xf32> to vector<8x1xf32>
    %101 = tpu.reciprocal %100 {approx = true} : vector<8x1xf32> -> vector<8x1xf32>
    %102 = vector.broadcast %101 : vector<8x1xf32> to vector<8x16xf32>
    %103 = arith.mulf %98, %102 : vector<8x16xf32>
    %104 = arith.truncf %103 : vector<8x16xf32> to vector<8x16xbf16>
    %cst_48 = arith.constant dense<0.000000e+00> : vector<8x8xf32>
    %105 = tpu.matmul %104, %91, %cst_48 {dimension_numbers = #tpu.dot_dimension_numbers<[1], [0], [0], [1], [0, 0, 1, 1], [], []>} : vector<8x16xbf16>, vector<16x8xbf16>, vector<8x8xf32> -> vector<8x8xf32>
    %106 = arith.truncf %105 : vector<8x8xf32> to vector<8x8xbf16>
    %107 = arith.index_cast %c2_i32 : i32 to index
    %c0_49 = arith.constant 0 : index
    %c0_50 = arith.constant 0 : index
    %108 = vector.load %arg7[%107, %c0_49, %c0_50] : memref<4x8x32xbf16, #tpu.memory_space<vmem>>, vector<1x8x32xbf16>
    %109 = vector.shape_cast %108 : vector<1x8x32xbf16> to vector<8x32xbf16>
    %cst_51 = arith.constant dense<0.000000e+00> : vector<8x32xf32>
    %110 = tpu.matmul %106, %109, %cst_51 {dimension_numbers = #tpu.dot_dimension_numbers<[1], [0], [0], [1], [0, 0, 1, 1], [], []>} : vector<8x8xbf16>, vector<8x32xbf16>, vector<8x32xf32> -> vector<8x32xf32>
    %111 = arith.addf %76, %110 : vector<8x32xf32>
    %c3_i32 = arith.constant 3 : i32
    %112 = arith.index_cast %c3_i32 : i32 to index
    %c0_52 = arith.constant 0 : index
    %c0_53 = arith.constant 0 : index
    %113 = vector.load %arg4[%112, %c0_52, %c0_53] : memref<4x32x8xbf16, #tpu.memory_space<vmem>>, vector<1x32x8xbf16>
    %114 = vector.shape_cast %113 : vector<1x32x8xbf16> to vector<32x8xbf16>
    %cst_54 = arith.constant dense<0.000000e+00> : vector<8x8xf32>
    %115 = tpu.matmul %2, %114, %cst_54 {dimension_numbers = #tpu.dot_dimension_numbers<[1], [0], [0], [1], [0, 0, 1, 1], [], []>} : vector<8x32xbf16>, vector<32x8xbf16>, vector<8x8xf32> -> vector<8x8xf32>
    %116 = arith.index_cast %c3_i32 : i32 to index
    %c0_55 = arith.constant 0 : index
    %c0_56 = arith.constant 0 : index
    %117 = vector.load %arg8[%116, %c0_55, %c0_56] : memref<4x1x8xf32, #tpu.memory_space<vmem>>, vector<1x1x8xf32>
    %118 = vector.shape_cast %117 : vector<1x1x8xf32> to vector<1x8xf32>
    %119 = vector.broadcast %118 : vector<1x8xf32> to vector<8x8xf32>
    %120 = arith.addf %115, %119 : vector<8x8xf32>
    %121 = arith.index_cast %c3_i32 : i32 to index
    %c0_57 = arith.constant 0 : index
    %c0_58 = arith.constant 0 : index
    %122 = vector.load %arg21[%121, %c0_57, %c0_58] : memref<4x16x8xbf16, #tpu.memory_space<vmem>>, vector<1x16x8xbf16>
    %123 = vector.shape_cast %122 : vector<1x16x8xbf16> to vector<16x8xbf16>
    %124 = arith.index_cast %c3_i32 : i32 to index
    %c0_59 = arith.constant 0 : index
    %c0_60 = arith.constant 0 : index
    %125 = vector.load %arg22[%124, %c0_59, %c0_60] : memref<4x16x8xbf16, #tpu.memory_space<vmem>>, vector<1x16x8xbf16>
    %126 = vector.shape_cast %125 : vector<1x16x8xbf16> to vector<16x8xbf16>
    %127 = arith.truncf %120 : vector<8x8xf32> to vector<8x8xbf16>
    %cst_61 = arith.constant dense<0.000000e+00> : vector<8x16xf32>
    %128 = tpu.matmul %127, %123, %cst_61 {dimension_numbers = #tpu.dot_dimension_numbers<[1], [1], [0], [0], [0, 0, 1, 0], [], []>} : vector<8x8xbf16>, vector<16x8xbf16>, vector<8x16xf32> -> vector<8x16xf32>
    %cst_62 = arith.constant dense<0xFF800000> : vector<8xf32>
    %129 = vector.multi_reduction <maximumf>, %128, %cst_62 [1] : vector<8x16xf32> to vector<8xf32>
    %130 = vector.shape_cast %129 : vector<8xf32> to vector<8x1xf32>
    %131 = vector.broadcast %130 : vector<8x1xf32> to vector<8x16xf32>
    %132 = arith.subf %128, %131 : vector<8x16xf32>
    %133 = math.exp %132 : vector<8x16xf32>
    %cst_63 = arith.constant dense<0.000000e+00> : vector<8xf32>
    %134 = vector.multi_reduction <add>, %133, %cst_63 [1] : vector<8x16xf32> to vector<8xf32>
    %135 = vector.shape_cast %134 : vector<8xf32> to vector<8x1xf32>
    %136 = tpu.reciprocal %135 {approx = true} : vector<8x1xf32> -> vector<8x1xf32>
    %137 = vector.broadcast %136 : vector<8x1xf32> to vector<8x16xf32>
    %138 = arith.mulf %133, %137 : vector<8x16xf32>
    %139 = arith.truncf %138 : vector<8x16xf32> to vector<8x16xbf16>
    %cst_64 = arith.constant dense<0.000000e+00> : vector<8x8xf32>
    %140 = tpu.matmul %139, %126, %cst_64 {dimension_numbers = #tpu.dot_dimension_numbers<[1], [0], [0], [1], [0, 0, 1, 1], [], []>} : vector<8x16xbf16>, vector<16x8xbf16>, vector<8x8xf32> -> vector<8x8xf32>
    %141 = arith.truncf %140 : vector<8x8xf32> to vector<8x8xbf16>
    %142 = arith.index_cast %c3_i32 : i32 to index
    %c0_65 = arith.constant 0 : index
    %c0_66 = arith.constant 0 : index
    %143 = vector.load %arg7[%142, %c0_65, %c0_66] : memref<4x8x32xbf16, #tpu.memory_space<vmem>>, vector<1x8x32xbf16>
    %144 = vector.shape_cast %143 : vector<1x8x32xbf16> to vector<8x32xbf16>
    %cst_67 = arith.constant dense<0.000000e+00> : vector<8x32xf32>
    %145 = tpu.matmul %141, %144, %cst_67 {dimension_numbers = #tpu.dot_dimension_numbers<[1], [0], [0], [1], [0, 0, 1, 1], [], []>} : vector<8x8xbf16>, vector<8x32xbf16>, vector<8x32xf32> -> vector<8x32xf32>
    %146 = arith.addf %111, %145 : vector<8x32xf32>
    %c4_i32 = arith.constant 4 : i32
    %c0_68 = arith.constant 0 : index
    %c0_69 = arith.constant 0 : index
    %147 = vector.load %arg11[%c0_68, %c0_69] : memref<1x32xf32, #tpu.memory_space<vmem>>, vector<1x32xf32>
    %148 = vector.broadcast %147 : vector<1x32xf32> to vector<8x32xf32>
    %149 = arith.addf %146, %148 : vector<8x32xf32>
    %150 = arith.addf %1, %149 : vector<8x32xf32>
    %cst_70 = arith.constant dense<0.000000e+00> : vector<8xf32>
    %151 = vector.multi_reduction <add>, %150, %cst_70 [1] : vector<8x32xf32> to vector<8xf32>
    %152 = vector.shape_cast %151 : vector<8xf32> to vector<8x1xf32>
    %cst_71 = arith.constant 3.200000e+01 : f32
    %153 = vector.broadcast %cst_71 : f32 to vector<8x1xf32>
    %154 = arith.divf %152, %153 : vector<8x1xf32>
    %155 = vector.broadcast %154 : vector<8x1xf32> to vector<8x32xf32>
    %156 = arith.subf %150, %155 : vector<8x32xf32>
    %157 = arith.mulf %156, %156 : vector<8x32xf32>
    %cst_72 = arith.constant dense<0.000000e+00> : vector<8xf32>
    %158 = vector.multi_reduction <add>, %157, %cst_72 [1] : vector<8x32xf32> to vector<8xf32>
    %159 = vector.shape_cast %158 : vector<8xf32> to vector<8x1xf32>
    %cst_73 = arith.constant 3.200000e+01 : f32
    %160 = vector.broadcast %cst_73 : f32 to vector<8x1xf32>
    %161 = arith.divf %159, %160 : vector<8x1xf32>
    %162 = vector.broadcast %154 : vector<8x1xf32> to vector<8x32xf32>
    %163 = arith.subf %150, %162 : vector<8x32xf32>
    %cst_74 = arith.constant 9.99999974E-6 : f32
    %164 = vector.broadcast %cst_74 : f32 to vector<8x1xf32>
    %165 = arith.addf %161, %164 : vector<8x1xf32>
    %166 = math.rsqrt %165 : vector<8x1xf32>
    %167 = vector.broadcast %166 : vector<8x1xf32> to vector<8x32xf32>
    %168 = arith.mulf %163, %167 : vector<8x32xf32>
    %c0_75 = arith.constant 0 : index
    %c0_76 = arith.constant 0 : index
    %169 = vector.load %arg16[%c0_75, %c0_76] : memref<1x32xf32, #tpu.memory_space<vmem>>, vector<1x32xf32>
    %170 = vector.broadcast %169 : vector<1x32xf32> to vector<8x32xf32>
    %171 = arith.mulf %168, %170 : vector<8x32xf32>
    %c0_77 = arith.constant 0 : index
    %c0_78 = arith.constant 0 : index
    %172 = vector.load %arg17[%c0_77, %c0_78] : memref<1x32xf32, #tpu.memory_space<vmem>>, vector<1x32xf32>
    %173 = vector.broadcast %172 : vector<1x32xf32> to vector<8x32xf32>
    %174 = arith.addf %171, %173 : vector<8x32xf32>
    %175 = arith.truncf %174 : vector<8x32xf32> to vector<8x32xbf16>
    %c0_79 = arith.constant 0 : index
    %c0_80 = arith.constant 0 : index
    %176 = vector.load %arg12[%c0_79, %c0_80] : memref<32x64xbf16, #tpu.memory_space<vmem>>, vector<32x64xbf16>
    %cst_81 = arith.constant dense<0.000000e+00> : vector<8x64xf32>
    %177 = tpu.matmul %175, %176, %cst_81 {dimension_numbers = #tpu.dot_dimension_numbers<[1], [0], [0], [1], [0, 0, 1, 1], [], []>} : vector<8x32xbf16>, vector<32x64xbf16>, vector<8x64xf32> -> vector<8x64xf32>
    %c0_82 = arith.constant 0 : index
    %c0_83 = arith.constant 0 : index
    %178 = vector.load %arg13[%c0_82, %c0_83] : memref<1x64xf32, #tpu.memory_space<vmem>>, vector<1x64xf32>
    %179 = vector.broadcast %178 : vector<1x64xf32> to vector<8x64xf32>
    %180 = arith.addf %177, %179 : vector<8x64xf32>
    %cst_84 = arith.constant 5.000000e-01 : f32
    %181 = vector.broadcast %cst_84 : f32 to vector<8x64xf32>
    %182 = arith.mulf %181, %180 : vector<8x64xf32>
    %cst_85 = arith.constant 4.471500e-02 : f32
    %183 = vector.broadcast %cst_85 : f32 to vector<8x64xf32>
    %184 = arith.mulf %183, %180 : vector<8x64xf32>
    %185 = arith.mulf %184, %180 : vector<8x64xf32>
    %186 = arith.mulf %185, %180 : vector<8x64xf32>
    %187 = arith.addf %180, %186 : vector<8x64xf32>
    %cst_86 = arith.constant 0.797884583 : f32
    %188 = vector.broadcast %cst_86 : f32 to vector<8x64xf32>
    %189 = arith.mulf %188, %187 : vector<8x64xf32>
    %190 = math.tanh %189 : vector<8x64xf32>
    %cst_87 = arith.constant 1.000000e+00 : f32
    %191 = vector.broadcast %cst_87 : f32 to vector<8x64xf32>
    %192 = arith.addf %191, %190 : vector<8x64xf32>
    %193 = arith.mulf %182, %192 : vector<8x64xf32>
    %194 = arith.truncf %193 : vector<8x64xf32> to vector<8x64xbf16>
    %c0_88 = arith.constant 0 : index
    %c0_89 = arith.constant 0 : index
    %195 = vector.load %arg14[%c0_88, %c0_89] : memref<64x32xbf16, #tpu.memory_space<vmem>>, vector<64x32xbf16>
    %cst_90 = arith.constant dense<0.000000e+00> : vector<8x32xf32>
    %196 = tpu.matmul %194, %195, %cst_90 {dimension_numbers = #tpu.dot_dimension_numbers<[1], [0], [0], [1], [0, 0, 1, 1], [], []>} : vector<8x64xbf16>, vector<64x32xbf16>, vector<8x32xf32> -> vector<8x32xf32>
    %c0_91 = arith.constant 0 : index
    %c0_92 = arith.constant 0 : index
    %197 = vector.load %arg15[%c0_91, %c0_92] : memref<1x32xf32, #tpu.memory_space<vmem>>, vector<1x32xf32>
    %198 = vector.broadcast %197 : vector<1x32xf32> to vector<8x32xf32>
    %199 = arith.addf %196, %198 : vector<8x32xf32>
    %200 = arith.addf %174, %199 : vector<8x32xf32>
    %cst_93 = arith.constant dense<0.000000e+00> : vector<8xf32>
    %201 = vector.multi_reduction <add>, %200, %cst_93 [1] : vector<8x32xf32> to vector<8xf32>
    %202 = vector.shape_cast %201 : vector<8xf32> to vector<8x1xf32>
    %cst_94 = arith.constant 3.200000e+01 : f32
    %203 = vector.broadcast %cst_94 : f32 to vector<8x1xf32>
    %204 = arith.divf %202, %203 : vector<8x1xf32>
    %205 = vector.broadcast %204 : vector<8x1xf32> to vector<8x32xf32>
    %206 = arith.subf %200, %205 : vector<8x32xf32>
    %207 = arith.mulf %206, %206 : vector<8x32xf32>
    %cst_95 = arith.constant dense<0.000000e+00> : vector<8xf32>
    %208 = vector.multi_reduction <add>, %207, %cst_95 [1] : vector<8x32xf32> to vector<8xf32>
    %209 = vector.shape_cast %208 : vector<8xf32> to vector<8x1xf32>
    %cst_96 = arith.constant 3.200000e+01 : f32
    %210 = vector.broadcast %cst_96 : f32 to vector<8x1xf32>
    %211 = arith.divf %209, %210 : vector<8x1xf32>
    %212 = vector.broadcast %204 : vector<8x1xf32> to vector<8x32xf32>
    %213 = arith.subf %200, %212 : vector<8x32xf32>
    %cst_97 = arith.constant 9.99999974E-6 : f32
    %214 = vector.broadcast %cst_97 : f32 to vector<8x1xf32>
    %215 = arith.addf %211, %214 : vector<8x1xf32>
    %216 = math.rsqrt %215 : vector<8x1xf32>
    %217 = vector.broadcast %216 : vector<8x1xf32> to vector<8x32xf32>
    %218 = arith.mulf %213, %217 : vector<8x32xf32>
    %c0_98 = arith.constant 0 : index
    %c0_99 = arith.constant 0 : index
    %219 = vector.load %arg18[%c0_98, %c0_99] : memref<1x32xf32, #tpu.memory_space<vmem>>, vector<1x32xf32>
    %220 = vector.broadcast %219 : vector<1x32xf32> to vector<8x32xf32>
    %221 = arith.mulf %218, %220 : vector<8x32xf32>
    %c0_100 = arith.constant 0 : index
    %c0_101 = arith.constant 0 : index
    %222 = vector.load %arg19[%c0_100, %c0_101] : memref<1x32xf32, #tpu.memory_space<vmem>>, vector<1x32xf32>
    %223 = vector.broadcast %222 : vector<1x32xf32> to vector<8x32xf32>
    %224 = arith.addf %221, %223 : vector<8x32xf32>
    %c0_102 = arith.constant 0 : index
    %c0_103 = arith.constant 0 : index
    %c0_104 = arith.constant 0 : index
    %225 = vector.load %arg20[%c0_102, %c0_103, %c0_104] : memref<1x8x32xf32, #tpu.memory_space<vmem>>, vector<1x8x32xf32>
    %226 = vector.shape_cast %225 : vector<1x8x32xf32> to vector<8x32xf32>
    %227 = vector.shape_cast %224 : vector<8x32xf32> to vector<1x8x32xf32>
    tpu.vector_store %arg20[%c0_102, %c0_103, %c0_104], %227 {strides = array<i32>} : memref<1x8x32xf32, #tpu.memory_space<vmem>>, vector<1x8x32xf32>,
    return
  }
  func.func @transform_0(%arg0: i32, %arg1: i32) -> (i32, i32, i32) {
    %c0_i32 = arith.constant 0 : i32
    %c0_i32_0 = arith.constant 0 : i32
    return %arg0, %arg1, %c0_i32 : i32, i32, i32
  }
  func.func @transform_1(%arg0: i32, %arg1: i32) -> (i32, i32, i32) {
    %c0_i32 = arith.constant 0 : i32
    %c0_i32_0 = arith.constant 0 : i32
    %c0_i32_1 = arith.constant 0 : i32
    return %arg0, %c0_i32, %c0_i32_0 : i32, i32, i32
  }
  func.func @transform_2(%arg0: i32, %arg1: i32) -> (i32, i32, i32) {
    %c0_i32 = arith.constant 0 : i32
    %c0_i32_0 = arith.constant 0 : i32
    %c0_i32_1 = arith.constant 0 : i32
    %c0_i32_2 = arith.constant 0 : i32
    return %c0_i32, %c0_i32_0, %c0_i32_1 : i32, i32, i32
  }
  func.func @transform_3(%arg0: i32, %arg1: i32) -> (i32, i32, i32) {
    %c0_i32 = arith.constant 0 : i32
    %c0_i32_0 = arith.constant 0 : i32
    %c0_i32_1 = arith.constant 0 : i32
    %c0_i32_2 = arith.constant 0 : i32
    return %c0_i32, %c0_i32_0, %c0_i32_1 : i32, i32, i32
  }
  func.func @transform_4(%arg0: i32, %arg1: i32) -> (i32, i32, i32) {
    %c0_i32 = arith.constant 0 : i32
    %c0_i32_0 = arith.constant 0 : i32
    %c0_i32_1 = arith.constant 0 : i32
    %c0_i32_2 = arith.constant 0 : i32
    return %c0_i32, %c0_i32_0, %c0_i32_1 : i32, i32, i32
  }
  func.func @transform_5(%arg0: i32, %arg1: i32) -> (i32, i32, i32) {
    %c0_i32 = arith.constant 0 : i32
    %c0_i32_0 = arith.constant 0 : i32
    %c0_i32_1 = arith.constant 0 : i32
    %c0_i32_2 = arith.constant 0 : i32
    return %c0_i32, %c0_i32_0, %c0_i32_1 : i32, i32, i32
  }
  func.func @transform_6(%arg0: i32, %arg1: i32) -> (i32, i32, i32) {
    %c0_i32 = arith.constant 0 : i32
    %c0_i32_0 = arith.constant 0 : i32
    %c0_i32_1 = arith.constant 0 : i32
    %c0_i32_2 = arith.constant 0 : i32
    return %c0_i32, %c0_i32_0, %c0_i32_1 : i32, i32, i32
  }
  func.func @transform_7(%arg0: i32, %arg1: i32) -> (i32, i32, i32) {
    %c0_i32 = arith.constant 0 : i32
    %c0_i32_0 = arith.constant 0 : i32
    %c0_i32_1 = arith.constant 0 : i32
    %c0_i32_2 = arith.constant 0 : i32
    return %c0_i32, %c0_i32_0, %c0_i32_1 : i32, i32, i32
  }
  func.func @transform_8(%arg0: i32, %arg1: i32) -> (i32, i32, i32) {
    %c0_i32 = arith.constant 0 : i32
    %c0_i32_0 = arith.constant 0 : i32
    %c0_i32_1 = arith.constant 0 : i32
    %c0_i32_2 = arith.constant 0 : i32
    return %c0_i32, %c0_i32_0, %c0_i32_1 : i32, i32, i32
  }
  func.func @transform_9(%arg0: i32, %arg1: i32) -> (i32, i32) {
    %c0_i32 = arith.constant 0 : i32
    %c0_i32_0 = arith.constant 0 : i32
    %c0_i32_1 = arith.constant 0 : i32
    return %c0_i32, %c0_i32_0 : i32, i32
  }
  func.func @transform_10(%arg0: i32, %arg1: i32) -> (i32, i32) {
    %c0_i32 = arith.constant 0 : i32
    %c0_i32_0 = arith.constant 0 : i32
    %c0_i32_1 = arith.constant 0 : i32
    return %c0_i32, %c0_i32_0 : i32, i32
  }
  func.func @transform_11(%arg0: i32, %arg1: i32) -> (i32, i32) {
    %c0_i32 = arith.constant 0 : i32
    %c0_i32_0 = arith.constant 0 : i32
    %c0_i32_1 = arith.constant 0 : i32
    return %c0_i32, %c0_i32_0 : i32, i32
  }
  func.func @transform_12(%arg0: i32, %arg1: i32) -> (i32, i32) {
    %c0_i32 = arith.constant 0 : i32
    %c0_i32_0 = arith.constant 0 : i32
    %c0_i32_1 = arith.constant 0 : i32
    return %c0_i32, %c0_i32_0 : i32, i32
  }
  func.func @transform_13(%arg0: i32, %arg1: i32) -> (i32, i32) {
    %c0_i32 = arith.constant 0 : i32
    %c0_i32_0 = arith.constant 0 : i32
    %c0_i32_1 = arith.constant 0 : i32
    return %c0_i32, %c0_i32_0 : i32, i32
  }
  func.func @transform_14(%arg0: i32, %arg1: i32) -> (i32, i32) {
    %c0_i32 = arith.constant 0 : i32
    %c0_i32_0 = arith.constant 0 : i32
    %c0_i32_1 = arith.constant 0 : i32
    return %c0_i32, %c0_i32_0 : i32, i32
  }
  func.func @transform_15(%arg0: i32, %arg1: i32) -> (i32, i32) {
    %c0_i32 = arith.constant 0 : i32
    %c0_i32_0 = arith.constant 0 : i32
    %c0_i32_1 = arith.constant 0 : i32
    return %c0_i32, %c0_i32_0 : i32, i32
  }
  func.func @transform_16(%arg0: i32, %arg1: i32) -> (i32, i32) {
    %c0_i32 = arith.constant 0 : i32
    %c0_i32_0 = arith.constant 0 : i32
    %c0_i32_1 = arith.constant 0 : i32
    return %c0_i32, %c0_i32_0 : i32, i32
  }
  func.func @transform_17(%arg0: i32, %arg1: i32) -> (i32, i32) {
    %c0_i32 = arith.constant 0 : i32
    %c0_i32_0 = arith.constant 0 : i32
    %c0_i32_1 = arith.constant 0 : i32
    return %c0_i32, %c0_i32_0 : i32, i32
  }
  func.func @transform_18(%arg0: i32, %arg1: i32) -> (i32, i32, i32) {
    %c0_i32 = arith.constant 0 : i32
    %c0_i32_0 = arith.constant 0 : i32
    return %arg0, %arg1, %c0_i32 : i32, i32, i32
  }
}

</mosaic_0001>

<bundles_post_ra>
// kernel: tpu_custom_call.1
= control target key start
LH: loop header
LB: loop body
LE: loop exit
PB: predicated region body
PF: predicated region fallthrough
CT: control target
= control target key end

     0   :  { %s2701_s0 = inlined_call_operand.vmem [shape: f32[2,16,32], index: 0, kind: input, shape index: {}]   ;;  %s2702_s1 = inlined_call_operand.vmem [shape: f32[2,16,32], index: 1, kind: input, shape index: {}]   ;;  %s2703_s2 = inlined_call_operand.vmem [shape: bf16[4,32,8], index: 2, kind: input, shape index: {}]   ;;  %s2704_s3 = inlined_call_operand.vmem [shape: bf16[4,32,8], index: 3, kind: input, shape index: {}]   ;;  %s2705_s4 = inlined_call_operand.vmem [shape: bf16[4,32,8], index: 4, kind: input, shape index: {}]   ;;  %s2706_s5 = inlined_call_operand.vmem [shape: bf16[4,8,32], index: 5, kind: input, shape index: {}]   ;;  %s2707_s6 = inlined_call_operand.vmem [shape: f32[4,1,8], index: 6, kind: input, shape index: {}]   ;;  %s2708_s7 = inlined_call_operand.vmem [shape: f32[4,1,8], index: 7, kind: input, shape index: {}]   ;;  %s2709_s8 = inlined_call_operand.vmem [shape: f32[4,1,8], index: 8, kind: input, shape index: {}]   ;;  %s2710_s9 = inlined_call_operand.vmem [shape: f32[1,32], index: 9, kind: input, shape index: {}]   ;;  %s2711_s10 = inlined_call_operand.vmem [shape: bf16[32,64], index: 10, kind: input, shape index: {}]   ;;  %s2712_s11 = inlined_call_operand.vmem [shape: f32[1,64], index: 11, kind: input, shape index: {}]   ;;  %s2713_s12 = inlined_call_operand.vmem [shape: bf16[64,32], index: 12, kind: input, shape index: {}]   ;;  %s2714_s13 = inlined_call_operand.vmem [shape: f32[1,32], index: 13, kind: input, shape index: {}]   ;;  %s2715_s14 = inlined_call_operand.vmem [shape: f32[1,32], index: 14, kind: input, shape index: {}]   ;;  %s2716_s15 = inlined_call_operand.vmem [shape: f32[1,32], index: 15, kind: input, shape index: {}]   ;;  %s2717_s16 = inlined_call_operand.vmem [shape: f32[1,32], index: 16, kind: input, shape index: {}]   ;;  %s2718_s17 = inlined_call_operand.vmem [shape: f32[1,32], index: 17, kind: input, shape index: {}]   ;;  %s2719_s18 = inlined_call_operand.hbm [shape: f32[2,16,32], index: 18, kind: output, shape index: {}]  }
   0x1   :  { %2734 = sst [smem:[#allocation17_spill]] %s2701_s0 }
   0x2   :  { %2735 = sst [smem:[#allocation18_spill]] %s2702_s1 }
   0x3   :  { %2736 = sst [smem:[#allocation19_spill]] %s2703_s2 }
   0x4   :  { %2737 = sst [smem:[#allocation20_spill]] %s2714_s13 }
   0x5   :  { %2738 = sst [smem:[#allocation21_spill]] %s2717_s16 }
   0x6   :  { %2739 = sst [smem:[#allocation22_spill]] %s2718_s17 }
   0x7   :  { %2740 = sst [smem:[#allocation23_spill]] %s2719_s18 }
   0x8   :  { %23 = vsyncpa [#allocation5], 0 }
   0x9   :  { %25 = vsyncpa [#allocation5 + $0x1], 0  ;;  %s2323_s27 = smov 0   ;;  %s2325_s28 = smov 0  }
   0xa   :  { %s2327_s29 = smov 0   ;;  %s2329_s30 = smov 0  }
   0xb   :  { %s2331_s0 = smov 0   ;;  %s2333_s19 = smov 0  }
   0xc   :  { %s2335_s1 = smov 0   ;;  %s2337_s20 = smov 0  }
   0xd LB: > { %2741 = sst [smem:[#allocation7_spill]] %s2197_s27  ;;  %s1735_s21 = sadd.s32 4294967295, %s2225_s20   ;;  %s2225_s20 = sphi %s2337_s20, %s31_s20   ;;  %s2221_s1 = sphi %s2335_s1, %s2770_s1   ;;  %s2217_s19 = sphi %s2333_s19, %s2769_s19   ;;  %s2213_s0 = sphi %s2331_s0, %s2768_s0   ;;  %s2209_s30 = sphi %s2329_s30, %s2767_s30   ;;  %s2205_s29 = sphi %s2327_s29, %s2766_s29   ;;  %s2201_s28 = sphi %s2325_s28, %s2772_s28   ;;  %s2197_s27 = sphi %s2323_s27, %s2771_s27  }
   0xe   : > { %2742 = sst [smem:[#allocation8_spill]] %s2205_s29  ;;  %s1736_s22 = sadd.s32 4294967294, %s2225_s20  }
   0xf   : > { %2743 = sst [smem:[#allocation9_spill]] %s2217_s19  ;;  %s40_s2 = sadd.s32 1, %s2217_s19 }
  0x10   : > { %2744 = sst [smem:[#allocation10_spill]] %s2221_s1  ;;  %p41_p0 = scmp.ge.s32.totalorder %s40_s2, 2 }
  0x11   : > { %2745 = sst [smem:[#allocation11_spill]] %s2225_s20  ;;  %s43_s23 = sadd.s32 1, %s2221_s1 }
  0x12   : > { %p452_p1 = scmp.ne.s32.totalorder %s2205_s29, %s2201_s28  ;;  %p453_p2 = scmp.eq.s32.totalorder %s1735_s21, 3 }
  0x13   : > { %s2774_s2 = smov (%p41_p0, %s40_s2), 0  ;;  %s2776_s23 = smov (!%p41_p0, %s43_s23), %s2221_s1 }
  0x14   : > { %2746 = sst [smem:[#allocation12_spill]] %s2774_s2  ;;  %s438_s24 = ssub.s32 %s2217_s19, %s2774_s2 }
  0x15   : > { %p2374_p3 = por %p453_p2, %p452_p1  ;;  %p45_p4 = scmp.ge.s32.totalorder %s2776_s23, 2 }
  0x16   : > { %p458_p5 = scmp.ne.s32.totalorder %s2201_s28, %s2197_s27  ;;  %p459_p6 = scmp.eq.s32.totalorder %s1736_s22, 3 }
  0x17   : > { %s2747_s25 = scalar_select %p2374_p3, 1, 0 }
  0x18   : > { %p1739_p7 = scmp.ge.s32.totalorder %s2225_s20, 1  ;;  %s2778_s23 = smov (%p45_p4, %s2776_s23), 0 }
  0x19   : > { %2748 = sst [smem:[#allocation13_spill]] %s2747_s25  ;;  %p2383_p8 = por %p459_p6, %p458_p5 }
  0x1a   : > { %2749 = sst [smem:[#allocation14_spill]] %s2778_s23  ;;  %p544_p9 = scmp.lt.s32.totalorder %s2225_s20, 5 }
  0x1b   : > { %s2750_s26 = scalar_select %p2383_p8, 1, 0 }
  0x1c   : > { %s437_s21 = ssub.s32 %s2221_s1, %s2778_s23  ;;  %s442_s17 = sadd.s32 1, %s2205_s29 }
  0x1d   : > { %2751 = sst [smem:[#allocation15_spill]] %s2750_s26  ;;  %s439_s18 = sor.u32 %s438_s24, %s437_s21 }
  0x1e   : > { %p545_p10 = pnand %p1739_p7, %p544_p9  ;;  %p440_p11 = scmp.eq.s32.totalorder %s439_s18, 0 }
  0x1f   : > { %s2733_s22 = sand.u32 (!%p545_p10), 1, %s2201_s28   ;;  %p606_p12 = scmp.lt.s32.totalorder (!%p545_p10), %s2213_s0, 1 }
  0x20   : > { %s2392_s2 = scalar_select %p440_p11, %s2205_s29, %s442_s17  }
  0x21   : > { %548 = sbr.rel (%p545_p10) target bundleno = 2657 (0xa61), region = 92  ;;  %s2398_s19 = sshll.u32 (!%p545_p10), %s2733_s22, 3 }
  0x22   : > { %2752 = sst [smem:[#allocation16_spill]] %s2392_s2  ;;  %p608_p13 = scmp.lt.s32.totalorder (!%p545_p10), %s2209_s30, 1 }
  0x23   : > { %s2753_s29 = sld [smem:[#allocation18_spill]] (!%p545_p10)  ;;  %s605_s22 = scalar_lea.vmem (!%p545_p10), [#allocation4], %s2398_s19 }
  0x24   : > { %s2754_s16 = sld [smem:[#allocation17_spill]] (!%p545_p10)  ;;  %p1745_p0 = scmp.ne.s32.totalorder (!%p545_p10), %s2209_s30, 0 }
  0x26   : > { %s607_s23 = scalar_select %p606_p12, %s2213_s0, 1 }
  0x27   : > { %s609_s24 = scalar_select %p608_p13, %s2209_s30, 1 }
  0x28   : > { %s1741_s21 = sshll.u32 %s607_s23, 1  ;;  %s1977_s18 = sshll.u32 %s607_s23, 4 }
  0x29   : > { %s611_s17 = sadd.s32 %s1741_s21, %s609_s24  ;;  %s618_s26 = scalar_lea.vmem %s2753_s29, %s1977_s18 }
  0x2a   : > { %s1742_s27 = sshll.u32 %s611_s17, 3  ;;  %625 = sbr.rel (%p1745_p0) target bundleno = 219 (0xdb), region = 96 }
  0x2b   : > { %s613_s13 = scalar_lea.vmem %s2754_s16, %s1742_s27 }
  0x2c   : > { %v2409_v0 = vld [vmem:[%s613_s13] sm:$0xff] }
  0x2d   : > { %v2413_v1 = vpack.c.bf16 %v2409_v0, %v2409_v0 }
  0x2f   : > { %v1979_v2 = vld [vmem:[%s2704_s3 + $0x8] sm:$0xff]  ;;  %v1983_v4 = vld [vmem:[%s2704_s3 + $0x18] sm:$0xff]  ;;  %v1978_v6 = vld [vmem:[%s2704_s3] sm:$0xff]  ;;  %vm649_vm0 = vcmask 261120   ;;  %vm703_vm1 = vcmask 60416  }
  0x30   : > { %v1981_v3 = vld [vmem:[%s2705_s4 + $0x8] sm:$0xff]  ;;  %v1985_v5 = vld [vmem:[%s2705_s4 + $0x18] sm:$0xff]  ;;  %659 = vmatpush.bf16.msra.mxu0 %v1979_v2  ;;  %v1980_v7 = vld [vmem:[%s2705_s4] sm:$0xff]  ;;  %738 = vmatpush.bf16.msra.mxu2 %v1983_v4 }
  0x31   : > { %693 = vmatpush.bf16.msra.mxu1 %v1981_v3  ;;  %v626_v8 = vld [vmem:[%s618_s26] sm:$0xff]  ;;  %774 = vmatpush.bf16.msra.mxu3 %v1985_v5  ;;  %v1982_v9 = vld [vmem:[%s2704_s3 + $0x10] sm:$0xff]  ;;  %v627_v11 = vld [vmem:[%s618_s26 + $0x8] sm:$0xff] }
  0x32   : > { %v1984_v10 = vld [vmem:[%s2705_s4 + $0x10] sm:$0xff]  ;;  %v1991_v12 = vld [vmem:[%s2704_s3 + $0x38] sm:$0xff]  ;;  %v628_v14 = vpack.c.bf16 %v627_v11, %v626_v8  ;;  %v1987_v15 = vld [vmem:[%s2704_s3 + $0x28] sm:$0xff] }
  0x33   : > { %v1993_v13 = vld [vmem:[%s2705_s4 + $0x38] sm:$0xff]  ;;  %v1989_v16 = vld [vmem:[%s2705_s4 + $0x28] sm:$0xff]  ;;  %v1990_v17 = vld [vmem:[%s2704_s3 + $0x30] sm:$0xff] }
  0x34   : > { %660 = vmatpush.bf16.msra.mxu0 %v1978_v6  ;;  %v1992_v18 = vld [vmem:[%s2705_s4 + $0x30] sm:$0xff]  ;;  %739 = vmatpush.bf16.msra.mxu2 %v1982_v9  ;;  %v1986_v19 = vld [vmem:[%s2704_s3 + $0x20] sm:$0xff] }
  0x35   : > { %694 = vmatpush.bf16.msra.mxu1 %v1980_v7  ;;  %775 = vmatpush.bf16.msra.mxu3 %v1984_v10  ;;  %v1988_v20 = vld [vmem:[%s2705_s4 + $0x20] sm:$0xff] }
  0x36   : > { %v2088_v21 = vld [vmem:[%s2708_s7] ss:$0 sm:$0xff]  ;;  %v2090_v29 = vld [vmem:[%s2708_s7 + $0x1] ss:$0 sm:$0xff]  ;;  %v2092_v43 = vld [vmem:[%s2708_s7 + $0x2] ss:$0 sm:$0xff] }
  0x37   : > { %1754 = vmatmul.msk.bf16.vlgmr.msra.gmra.mxu0 %vm649_vm0, %v628_v14  ;;  %1777 = vmatmul.msk.bf16.vlgmr.msra.gmra.mxu2 %vm649_vm0, %v628_v14  ;;  %v2089_v22 = vld [vmem:[%s2709_s8] ss:$0 sm:$0xff]  ;;  %v2091_v30 = vld [vmem:[%s2709_s8 + $0x1] ss:$0 sm:$0xff]  ;;  %v2093_v44 = vld [vmem:[%s2709_s8 + $0x2] ss:$0 sm:$0xff] }
  0x38   : > { %902 = vmatpush.bf16.msrb.mxu2 %v1991_v12  ;;  %1763 = vmatmul.msk.bf16.vlgmr.msra.gmra.mxu1 %vm649_vm0, %v628_v14  ;;  %v2094_v57 = vld [vmem:[%s2708_s7 + $0x3] ss:$0 sm:$0xff] }
  0x39   : > { %938 = vmatpush.bf16.msrb.mxu3 %v1993_v13  ;;  %820 = vmatpush.bf16.msrb.mxu0 %v1987_v15  ;;  %v2095_v58 = vld [vmem:[%s2709_s8 + $0x3] ss:$0 sm:$0xff] }
  0x3a   : > { %1791 = vmatmul.msk.bf16.vlgmr.msra.gmra.mxu3 %vm649_vm0, %v628_v14  ;;  %856 = vmatpush.bf16.msrb.mxu1 %v1989_v16 }
  0x3c   : > { %903 = vmatpush.bf16.msrb.mxu2 %v1990_v17 }
  0x3d   : > { %939 = vmatpush.bf16.msrb.mxu3 %v1992_v18  ;;  %821 = vmatpush.bf16.msrb.mxu0 %v1986_v19 }
  0x3e   : > { %857 = vmatpush.bf16.msrb.mxu1 %v1988_v20 }
  0x47   : > { %1805 = vmatmul.msk.bf16.vlgmr.msrb.gmra.mxu0 %vm649_vm0, %v628_v14  ;;  %1833 = vmatmul.msk.bf16.vlgmr.msrb.gmra.mxu2 %vm649_vm0, %v628_v14 }
  0x48   : > { %1819 = vmatmul.msk.bf16.vlgmr.msrb.gmra.mxu1 %vm649_vm0, %v628_v14 }
  0x4a   : > { %1847 = vmatmul.msk.bf16.vlgmr.msrb.gmra.mxu3 %vm649_vm0, %v628_v14 }
  0xb4   : > { %v662_v23 = vpop.f32.mrf.mxu0 }
  0xb5   : > { %v696_v24 = vpop.f32.mrf.mxu1  ;;  %v663_v25 = vadd.f32 %v2088_v21, %v662_v23 }
  0xb6   : > { %v697_v26 = vadd.f32 %v2089_v22, %v696_v24 }
  0xb7   : > { %v701_v27 = vpack.c.bf16 %v663_v25, %v663_v25 }
  0xb8   : > { %v706_v28 = vpack.c.bf16 %v697_v26, %v697_v26 }
  0xb9   : > { %704 = vst.msk [vmem:[#allocation2] sm:$0xf] %vm703_vm1, %v701_v27 }
  0xba   : > { %708 = vst.msk [vmem:[#allocation3] sm:$0xf] %vm703_vm1, %v706_v28  ;;  %v741_v31 = vpop.f32.mrf.mxu2 }
  0xbb   : > { %v742_v33 = vadd.f32 %v2090_v29, %v741_v31 }
  0xbc   : > { %v664_v35 = vpop.f32.mrf.mxu0 }
  0xbd   : > { %v777_v32 = vpop.f32.mrf.mxu3  ;;  %v698_v36 = vpop.f32.mrf.mxu1  ;;  %v665_v37 = vadd.f32 %v2088_v21, %v664_v35  ;;  %v782_v39 = vpack.c.bf16 %v742_v33, %v742_v33 }
  0xbe   : > { %v778_v34 = vadd.f32 %v2091_v30, %v777_v32  ;;  %v699_v38 = vadd.f32 %v2089_v22, %v698_v36 }
  0xbf   : > { %v702_v41 = vpack.c.bf16 %v665_v37, %v665_v37  ;;  %785 = vst.msk [vmem:[#allocation2 + $0x8] sm:$0xf] %vm703_vm1, %v782_v39 }
  0xc0   : > { %v787_v40 = vpack.c.bf16 %v778_v34, %v778_v34  ;;  %v707_v42 = vpack.c.bf16 %v699_v38, %v699_v38 }
  0xc1   : > { %705 = vst.msk [vmem:[#allocation2 + $0x4] sm:$0xf] %vm703_vm1, %v702_v41 }
  0xc2   : > { %790 = vst.msk [vmem:[#allocation3 + $0x8] sm:$0xf] %vm703_vm1, %v787_v40  ;;  %v743_v45 = vpop.f32.mrf.mxu2 }
  0xc3   : > { %709 = vst.msk [vmem:[#allocation3 + $0x4] sm:$0xf] %vm703_vm1, %v707_v42  ;;  %v744_v47 = vadd.f32 %v2090_v29, %v743_v45 }
  0xc4   : > { %v823_v49 = vpop.f32.mrf.mxu0 }
  0xc5   : > { %v779_v46 = vpop.f32.mrf.mxu3  ;;  %v859_v50 = vpop.f32.mrf.mxu1  ;;  %v824_v51 = vadd.f32 %v2092_v43, %v823_v49  ;;  %v783_v53 = vpack.c.bf16 %v744_v47, %v744_v47 }
  0xc6   : > { %v780_v48 = vadd.f32 %v2091_v30, %v779_v46  ;;  %v860_v52 = vadd.f32 %v2093_v44, %v859_v50 }
  0xc7   : > { %v864_v55 = vpack.c.bf16 %v824_v51, %v824_v51  ;;  %786 = vst.msk [vmem:[#allocation2 + $0xc] sm:$0xf] %vm703_vm1, %v783_v53 }
  0xc8   : > { %v788_v54 = vpack.c.bf16 %v780_v48, %v780_v48  ;;  %v869_v56 = vpack.c.bf16 %v860_v52, %v860_v52 }
  0xc9   : > { %867 = vst.msk [vmem:[#allocation2 + $0x10] sm:$0xf] %vm703_vm1, %v864_v55 }
  0xca   : > { %791 = vst.msk [vmem:[#allocation3 + $0xc] sm:$0xf] %vm703_vm1, %v788_v54  ;;  %v905_v59 = vpop.f32.mrf.mxu2 }
  0xcb   : > { %872 = vst.msk [vmem:[#allocation3 + $0x10] sm:$0xf] %vm703_vm1, %v869_v56  ;;  %v906_v61 = vadd.f32 %v2094_v57, %v905_v59 }
  0xcc   : > { %v825_v63 = vpop.f32.mrf.mxu0 }
  0xcd   : > { %v941_v60 = vpop.f32.mrf.mxu3  ;;  %v861_v2 = vpop.f32.mrf.mxu1  ;;  %v826_v3 = vadd.f32 %v2092_v43, %v825_v63  ;;  %v946_v5 = vpack.c.bf16 %v906_v61, %v906_v61 }
  0xce   : > { %v942_v62 = vadd.f32 %v2095_v58, %v941_v60  ;;  %v862_v4 = vadd.f32 %v2093_v44, %v861_v2 }
  0xcf   : > { %v865_v7 = vpack.c.bf16 %v826_v3, %v826_v3  ;;  %949 = vst.msk [vmem:[#allocation2 + $0x18] sm:$0xf] %vm703_vm1, %v946_v5 }
  0xd0   : > { %v951_v6 = vpack.c.bf16 %v942_v62, %v942_v62  ;;  %v870_v8 = vpack.c.bf16 %v862_v4, %v862_v4 }
  0xd1   : > { %868 = vst.msk [vmem:[#allocation2 + $0x14] sm:$0xf] %vm703_vm1, %v865_v7 }
  0xd2   : > { %954 = vst.msk [vmem:[#allocation3 + $0x18] sm:$0xf] %vm703_vm1, %v951_v6  ;;  %v907_v9 = vpop.f32.mrf.mxu2 }
  0xd3   : > { %873 = vst.msk [vmem:[#allocation3 + $0x14] sm:$0xf] %vm703_vm1, %v870_v8  ;;  %v908_v11 = vadd.f32 %v2094_v57, %v907_v9 }
  0xd5   : > { %v943_v10 = vpop.f32.mrf.mxu3  ;;  %v947_v13 = vpack.c.bf16 %v908_v11, %v908_v11 }
  0xd6   : > { %v944_v12 = vadd.f32 %v2095_v58, %v943_v10 }
  0xd7   : > { %950 = vst.msk [vmem:[#allocation2 + $0x1c] sm:$0xf] %vm703_vm1, %v947_v13 }
  0xd8   : > { %v952_v14 = vpack.c.bf16 %v944_v12, %v944_v12 }
  0xda   : > { %955 = vst.msk [vmem:[#allocation3 + $0x1c] sm:$0xf] %vm703_vm1, %v952_v14 }
  0xdb PF: > { %s2755_s25 = sld [smem:[#allocation19_spill]]  ;;  %v1996_v16 = vld [vmem:[#allocation2] sm:$0xff]  ;;  %vm1003_vm2 = vcmask 64512   ;;  %vm976_vm3 = vcmask 261120   ;;  %vm1023_vm4 = vcmask 130048   ;;  %v2000_v35 = vld [vmem:[#allocation2 + $0x8] sm:$0xff] }
  0xdc   : > { %v1008_v18 = vsel %vm1003_vm2, %v1996_v16, 0  ;;  %v2096_v19 = vld [vmem:[%s2707_s6] ss:$0 sm:$0xff]  ;;  %v1111_v36 = vsel %vm1003_vm2, %v2000_v35, 0  ;;  %v2097_v43 = vld [vmem:[%s2707_s6 + $0x1] ss:$0 sm:$0xff] }
  0xdd   : > { %1017 = vmatpush.bf16.xpose.msra.mxu1 %v1008_v18  ;;  %v1997_v34 = vld [vmem:[#allocation3] sm:$0xff]  ;;  %vm1166_vm5 = vcmask 1043456   ;;  %v2001_v57 = vld [vmem:[#allocation3 + $0x8] sm:$0xff]  ;;  %v2004_v4 = vld [vmem:[#allocation2 + $0x10] sm:$0xff]  ;;  %vm1576_vm10 = vcmask 523264   ;;  %s2756_s21 = sld [smem:[#allocation20_spill]] }
  0xde   : > { %1052 = vmatpush.bf16.msra.mxu2 %v1997_v34  ;;  %v1059_v46 = vld [vmem:[%s2706_s5] sm:$0xf]  ;;  %v1253_v5 = vsel %vm1003_vm2, %v2004_v4, 0  ;;  %s1973_s26 = sshll.u32 %s2213_s0, 1  ;;  %s2757_s29 = sld [smem:[#allocation21_spill]] }
  0xdf   : > { %v1187_v47 = vsel %vm1166_vm5, %v1059_v46, 0  ;;  %v2099_v18 = vld [vmem:[%s2707_s6 + $0x3] ss:$0 sm:$0xff]  ;;  %v1918_v46 = vld [vmem:[%s2706_s5 + $0x8] sm:$0xf]  ;;  %s1638_s18 = sadd.s32 %s2209_s30, %s1973_s26  ;;  %s2758_s16 = sld [smem:[#allocation23_spill]] }
  0xe0   : > { %s1974_s17 = sshll.u32 %s1638_s18, 3  ;;  %s2760_s2 = sld [smem:[#allocation22_spill]] }
  0xe1   : > { %v1995_v15 = vld [vmem:[%s2755_s25 + $0x8] sm:$0xff]  ;;  %v1994_v17 = vld [vmem:[%s2755_s25] sm:$0xff]  ;;  %v1999_v27 = vld [vmem:[%s2755_s25 + $0x18] sm:$0xff]  ;;  %s2761_s18 = sand.u32 1, %s2201_s28  }
  0xe2   : > { %986 = vmatpush.bf16.msra.mxu0 %v1995_v15  ;;  %1088 = vmatpush.bf16.msra.mxu3 %v1999_v27  ;;  %v1998_v28 = vld [vmem:[%s2755_s25 + $0x10] sm:$0xff]  ;;  %v2003_v54 = vld [vmem:[%s2755_s25 + $0x28] sm:$0xff]  ;;  %v2002_v55 = vld [vmem:[%s2755_s25 + $0x20] sm:$0xff]  ;;  %s1628_s23 = scalar_lea.sflag [#allocation5], %s2761_s18 }
  0xe3   : > { %1120 = vmatpush.bf16.xpose.msrb.mxu2 %v1111_v36  ;;  %v2007_v56 = vld [vmem:[%s2755_s25 + $0x38] sm:$0xff]  ;;  %v2006_v58 = vld [vmem:[%s2755_s25 + $0x30] sm:$0xff]  ;;  %v2098_v15 = vld [vmem:[%s2707_s6 + $0x2] ss:$0 sm:$0xff] }
  0xe5   : > { %s1640_s13 = scalar_lea.hbm %s2758_s16, %s1974_s17  ;;  %s2151_s20 = scalar_lea.hbm %s2758_s16, 32 }
  0xe6   : > { %987 = vmatpush.bf16.msra.mxu0 %v1994_v17  ;;  %1089 = vmatpush.bf16.msra.mxu3 %v1998_v28  ;;  %s1644_s26 = sshll.u32 %s1640_s13, 4  ;;  %s1645_s26 = int_to_ptr.hbm [resolvable:$true] %s1644_s26 }
  0xe7   : > { %s2145_s17 = sshra.s32 %s1645_s26, 4  ;;  %s2146_s17 = int_to_ptr.hbm [resolvable:$true] %s2145_s17 }
  0xe8   : > { %s2147_s24 = scalar_lea.hbm %s2146_s17, 8  ;;  %p2152_p5 = scmp.lt.s32.totalorder %s2146_s17, %s2758_s16 }
  0xe9   : > { %1856 = vmatmul.msk.bf16.vlgmr.msra.gmra.mxu0 %vm976_vm3, %v2413_v1  ;;  %1880 = vmatmul.msk.bf16.vlgmr.msra.gmra.mxu3 %vm976_vm3, %v2413_v1  ;;  %p2148_p1 = scmp.ne.s32.totalorder %s2146_s17, %s2147_s24  ;;  %p2153_p6 = scmp.lt.s32.totalorder %s2151_s20, %s2147_s24 }
  0xea   : > { %1196 = vmatpush.bf16.msrb.mxu3 %v1187_v47  ;;  %1154 = vmatpush.bf16.msrb.mxu0 %v2001_v57  ;;  %v1309_v47 = vsel %vm1166_vm5, %v1918_v46, 0 }
  0xeb   : > { %p2149_p2 = pnand %p2148_p1, %p2374_p3  ;;  %p2154_p7 = por %p2153_p6, %p2152_p5 }
  0xed   : > { %p2150_p4 = pneg %p2149_p2 }
  0xee   : > { %1262 = vmatpush.bf16.xpose.msra.mxu0 %v1253_v5  ;;  %1318 = vmatpush.bf16.msra.mxu3 %v1309_v47 }
  0xef   : > { %p2155_p9 = pnand %p2154_p7, %p2150_p4 }
 0x166   : > { %v989_v20 = vpop.f32.mrf.mxu0 }
 0x167   : > { %v990_v21 = vadd.f32 %v2096_v19, %v989_v20 }
 0x169   : > { %v997_v22 = vpack.c.bf16 %v990_v21, %v990_v21  ;;  %v1891_v21 = vld [vmem:[%s2706_s5 + $0x4] sm:$0xf] }
 0x16b   : > { %1861 = vmatmul.msk.bf16.vlgmr.msra.gmra.mxu1 %vm1003_vm2, %v997_v22  ;;  %v1168_v22 = vsel %vm1166_vm5, %v1891_v21, 0 }
 0x16c   : > { %v1091_v37 = vpop.f32.mrf.mxu3  ;;  %1177 = vmatpush.bf16.msrb.mxu1 %v1168_v22 }
 0x16d   : > { %v1092_v44 = vadd.f32 %v2097_v43, %v1091_v37 }
 0x16e   : > { %v991_v23 = vpop.f32.mrf.mxu0 }
 0x16f   : > { %v1101_v45 = vpack.c.bf16 %v1092_v44, %v1092_v44 }
 0x174   : > { %v1093_v38 = vpop.f32.mrf.mxu3 }
 0x1e8   : > { %v1019_v24 = vpop.f32.mrf.mxu1 }
 0x1e9   : > { %v1024_v25 = vsel %vm1023_vm4, %v1019_v24, -inf }
 0x1ea   : > { %1025 = vmax.xlane.f32.xlu0 %v1024_v25 }
 0x1f0   : > { %v1021_v26 = vpop.f32.mrf.mxu1 }
 0x25d   : > { %v1026_v29 = vpop.xlane.xlu0 %1025 }
 0x25e   : > { %v1027_v30 = vsub.f32 %v1019_v24, %v1026_v29 }
 0x260   : > { %v1028_v31 = vmul.f32 1.442695, %v1027_v30 }
 0x262   : > { %2107 = vpow2.f32 %v1028_v31 }
 0x268   : > { %v2108_v32 = vpop.eup %2107 }
 0x269   : > { %v1030_v33 = vsel %vm1023_vm4, %v2108_v32, 0.0 }
 0x26a   : > { %1031 = vadd.xlane.f32.xlu0 %v1030_v33  ;;  %v2005_v33 = vld [vmem:[#allocation3 + $0x10] sm:$0xff] }
 0x26b   : > { %1296 = vmatpush.bf16.msra.mxu1 %v2005_v33 }
 0x2dd   : > { %v1032_v39 = vpop.xlane.xlu0 %1031 }
 0x2de   : > { %2109 = vrcp.f32 %v1032_v39 }
 0x2e4   : > { %v2110_v40 = vpop.eup %2109 }
 0x2e5   : > { %v1034_v41 = vmul.f32 %v2110_v40, %v2108_v32 }
 0x2e7   : > { %v1035_v42 = vpack.c.bf16 %v1034_v41, %v1034_v41 }
 0x2e9   : > { %1866 = vmatmul.msk.bf16.vlgmr.msra.gmra.mxu2 %vm1023_vm4, %v1035_v42 }
 0x2ea   : > { %1230 = vmatpush.bf16.msra.mxu2 %v2003_v54 }
 0x2ee   : > { %1231 = vmatpush.bf16.msra.mxu2 %v2002_v55 }
 0x2f9   : > { %1885 = vmatmul.msk.bf16.vlgmr.msrb.gmra.mxu2 %vm1003_vm2, %v1101_v45  ;;  %v2009_v45 = vld [vmem:[#allocation3 + $0x18] sm:$0xff] }
 0x2fa   : > { %1353 = vmatpush.bf16.msrb.mxu2 %v2007_v56  ;;  %v1944_v56 = vld [vmem:[%s2706_s5 + $0xc] sm:$0xf] }
 0x2fb   : > { %v1432_v57 = vsel %vm1166_vm5, %v1944_v56, 0 }
 0x2fe   : > { %1354 = vmatpush.bf16.msrb.mxu2 %v2006_v58 }
 0x309   : > { %1907 = vmatmul.msk.bf16.vlgmr.msra.gmra.mxu2 %vm976_vm3, %v2413_v1 }
 0x319   : > { %1933 = vmatmul.msk.bf16.vlgmr.msrb.gmra.mxu2 %vm976_vm3, %v2413_v1  ;;  %v2008_v1 = vld [vmem:[#allocation2 + $0x18] sm:$0xff] }
 0x31a   : > { %v1376_v14 = vsel %vm1003_vm2, %v2008_v1, 0 }
 0x36c   : > { %v1054_v48 = vpop.f32.mrf.mxu2 }
 0x36d   : > { %v1058_v49 = vpack.c.bf16 %v1054_v48, %v1054_v48 }
 0x36f   : > { %1893 = vmatmul.msk.bf16.vlgmr.msrb.gmra.mxu3 %vm1003_vm2, %v1058_v49 }
 0x370   : > { %1441 = vmatpush.bf16.msrb.mxu3 %v1432_v57 }
 0x374   : > { %v1056_v50 = vpop.f32.mrf.mxu2 }
 0x37c   : > { %v1122_v51 = vpop.f32.mrf.mxu2 }
 0x37d   : > { %v1126_v52 = vsel %vm1023_vm4, %v1122_v51, -inf }
 0x37e   : > { %1127 = vmax.xlane.f32.xlu1 %v1126_v52 }
 0x384   : > { %v1124_v53 = vpop.f32.mrf.mxu2 }
 0x38c   : > { %v1233_v6 = vpop.f32.mrf.mxu2 }
 0x38d   : > { %v1234_v16 = vadd.f32 %v2098_v15, %v1233_v6 }
 0x38f   : > { %v1243_v17 = vpack.c.bf16 %v1234_v16, %v1234_v16 }
 0x394   : > { %v1235_v7 = vpop.f32.mrf.mxu2 }
 0x395   : > { %v2100_v7 = vld [vmem:[%s2710_s9] ss:$0 sm:$0xff] }
 0x39c   : > { %v1356_v8 = vpop.f32.mrf.mxu2 }
 0x39d   : > { %v1357_v19 = vadd.f32 %v2099_v18, %v1356_v8 }
 0x39f   : > { %v1366_v20 = vpack.c.bf16 %v1357_v19, %v1357_v19 }
 0x3a4   : > { %v1358_v11 = vpop.f32.mrf.mxu2 }
 0x3f1   : > { %v1128_v59 = vpop.xlane.xlu1 %1127 }
 0x3f2   : > { %v1129_v60 = vsub.f32 %v1122_v51, %v1128_v59  ;;  %v2564_v61 = vpop.f32.mrf.mxu3 }
 0x3f4   : > { %v1130_v62 = vmul.f32 1.442695, %v1129_v60 }
 0x3f6   : > { %2111 = vpow2.f32 %v1130_v62 }
 0x3fa   : > { %v1200_v63 = vpop.f32.mrf.mxu3 }
 0x3fc   : > { %v2112_v2 = vpop.eup %2111 }
 0x3fd   : > { %v1132_v3 = vsel %vm1023_vm4, %v2112_v2, 0.0 }
 0x3fe   : > { %1133 = vadd.xlane.f32.xlu1 %v1132_v3 }
 0x471   : > { %v1134_v9 = vpop.xlane.xlu1 %1133 }
 0x472   : > { %2113 = vrcp.f32 %v1134_v9 }
 0x478   : > { %v2114_v10 = vpop.eup %2113 }
 0x479   : > { %v1136_v12 = vmul.f32 %v2114_v10, %v2112_v2 }
 0x47b   : > { %v1137_v13 = vpack.c.bf16 %v1136_v12, %v1136_v12 }
 0x47d   : > { %1890 = vmatmul.msk.bf16.vlgmr.msrb.gmra.mxu0 %vm1023_vm4, %v1137_v13  ;;  %v2227_v13 = vmov 32.0  }
 0x47e   : > { %1385 = vmatpush.bf16.xpose.msrb.mxu0 %v1376_v14 }
 0x48d   : > { %1912 = vmatmul.msk.bf16.vlgmr.msra.gmra.mxu0 %vm1003_vm2, %v1243_v17 }
 0x49d   : > { %1938 = vmatmul.msk.bf16.vlgmr.msrb.gmra.mxu0 %vm1003_vm2, %v1366_v20 }
 0x4fa   : > { %v1156_v23 = vpop.f32.mrf.mxu0 }
 0x4fb   : > { %v1160_v24 = vpack.c.bf16 %v1156_v23, %v1156_v23  ;;  %v2011_v23 = vld [vmem:[%s2711_s10 + $0x8] sm:$0xff] }
 0x4fc   : > { %1523 = vmatpush.bf16.msra.mxu2 %v2011_v23 }
 0x4fd   : > { %1892 = vmatmul.msk.bf16.vlgmr.msrb.gmra.mxu1 %vm1003_vm2, %v1160_v24  ;;  %v2010_v24 = vld [vmem:[%s2711_s10] sm:$0xff] }
 0x4fe   : > { %1419 = vmatpush.bf16.msrb.mxu1 %v2009_v45  ;;  %v2103_v45 = vld [vmem:[%s2712_s11] ss:$0 sm:$0xff] }
 0x500   : > { %1524 = vmatpush.bf16.msra.mxu2 %v2010_v24 }
 0x502   : > { %v1158_v25 = vpop.f32.mrf.mxu0 }
 0x50a   : > { %v1264_v26 = vpop.f32.mrf.mxu0 }
 0x50b   : > { %v1268_v27 = vsel %vm1023_vm4, %v1264_v26, -inf }
 0x50c   : > { %1269 = vmax.xlane.f32.xlu2 %v1268_v27 }
 0x512   : > { %v1266_v28 = vpop.f32.mrf.mxu0 }
 0x51a   : > { %v1387_v29 = vpop.f32.mrf.mxu0 }
 0x51b   : > { %v1391_v30 = vsel %vm1023_vm4, %v1387_v29, -inf }
 0x51c   : > { %1392 = vmax.xlane.f32.xlu2 %v1391_v30 }
 0x522   : > { %v1389_v31 = vpop.f32.mrf.mxu0 }
 0x57a   : > { %v1179_v32 = vpop.f32.mrf.mxu1 }
 0x57b   : > { %v1199_v5 = vadd.f32 %v2564_v61, %v1179_v32 }
 0x57f   : > { %v1270_v34 = vpop.xlane.xlu2 %1269 }
 0x580   : > { %v1271_v35 = vsub.f32 %v1264_v26, %v1270_v34  ;;  %v2101_v34 = vld [vmem:[%s2715_s14] ss:$0 sm:$0xff] }
 0x582   : > { %v1272_v36 = vmul.f32 1.442695, %v1271_v35  ;;  %v1181_v37 = vpop.f32.mrf.mxu1 }
 0x584   : > { %2115 = vpow2.f32 %v1272_v36  ;;  %v2102_v36 = vld [vmem:[%s2716_s15] ss:$0 sm:$0xff] }
 0x58a   : > { %v2116_v38 = vpop.eup %2115 }
 0x58b   : > { %v1274_v39 = vsel %vm1023_vm4, %v2116_v38, 0.0 }
 0x58c   : > { %1275 = vadd.xlane.f32.xlu0 %v1274_v39 }
 0x58f   : > { %v1393_v40 = vpop.xlane.xlu2 %1392 }
 0x590   : > { %v1394_v41 = vsub.f32 %v1387_v29, %v1393_v40 }
 0x592   : > { %v1395_v42 = vmul.f32 1.442695, %v1394_v41  ;;  %v2015_v41 = vld [vmem:[%s2713_s12 + $0x18] sm:$0xff] }
 0x593   : > { %1584 = vmatpush.bf16.msra.mxu0 %v2015_v41 }
 0x594   : > { %2117 = vpow2.f32 %v1395_v42  ;;  %v2014_v42 = vld [vmem:[%s2713_s12 + $0x10] sm:$0xff] }
 0x597   : > { %1585 = vmatpush.bf16.msra.mxu0 %v2014_v42 }
 0x59a   : > { %v2118_v43 = vpop.eup %2117 }
 0x59b   : > { %v1397_v44 = vsel %vm1023_vm4, %v2118_v43, 0.0 }
 0x59c   : > { %1398 = vadd.xlane.f32.xlu1 %v1397_v44  ;;  %v2012_v44 = vld [vmem:[%s2713_s12] sm:$0xff] }
 0x5ff   : > { %v1276_v48 = vpop.xlane.xlu0 %1275 }
 0x600   : > { %2119 = vrcp.f32 %v1276_v48 }
 0x606   : > { %v2120_v49 = vpop.eup %2119 }
 0x607   : > { %v1278_v50 = vmul.f32 %v2120_v49, %v2116_v38 }
 0x609   : > { %v1279_v51 = vpack.c.bf16 %v1278_v50, %v1278_v50 }
 0x60b   : > { %1917 = vmatmul.msk.bf16.vlgmr.msra.gmra.mxu1 %vm1023_vm4, %v1279_v51 }
 0x60f   : > { %v1399_v52 = vpop.xlane.xlu1 %1398 }
 0x610   : > { %2121 = vrcp.f32 %v1399_v52 }
 0x611   : > { %2123 = vrcp.f32 %v2227_v13 }
 0x616   : > { %v2122_v53 = vpop.eup %2121 }
 0x617   : > { %v1401_v54 = vmul.f32 %v2122_v53, %v2118_v43  ;;  %v2124_v14 = vpop.eup %2123  ;;  %v2013_v43 = vld [vmem:[%s2713_s12 + $0x8] sm:$0xff] }
 0x618   : > { %v1458_v15 = vmul.f32 32.0, %v2124_v14  ;;  %vm1462_vm6 = vweird.f32 %v2124_v14  ;;  %1586 = vmatpush.bf16.msra.mxu0 %v2013_v43 }
 0x619   : > { %v1402_v55 = vpack.c.bf16 %v1401_v54, %v1401_v54 }
 0x61a   : > { %v1459_v16 = vsub.f32 1.0, %v1458_v15 }
 0x61b   : > { %1943 = vmatmul.msk.bf16.vlgmr.msrb.gmra.mxu1 %vm1023_vm4, %v1402_v55 }
 0x61c   : > { %v1460_v61 = vmul.f32 %v2124_v14, %v1459_v16  ;;  %1587 = vmatpush.bf16.msra.mxu0 %v2012_v44 }
 0x61e   : > { %v1461_v17 = vadd.f32 %v2124_v14, %v1460_v61  ;;  %v2105_v61 = vld [vmem:[%s2757_s29] ss:$0 sm:$0xff] }
 0x620   : > { %v2605_v18 = vsel %vm1462_vm6, %v2124_v14, %v1461_v17 }
 0x688   : > { %v1298_v58 = vpop.f32.mrf.mxu1 }
 0x689   : > { %v1302_v59 = vpack.c.bf16 %v1298_v58, %v1298_v58 }
 0x68b   : > { %1919 = vmatmul.msk.bf16.vlgmr.msra.gmra.mxu3 %vm1003_vm2, %v1302_v59  ;;  %v2104_v59 = vld [vmem:[%s2756_s21] ss:$0 sm:$0xff]  ;;  %s1642_s21 = sshll.u32 %s605_s22, 4  ;;  %s1643_s21 = int_to_ptr.vmem [resolvable:$true] %s1642_s21 }
 0x690   : > { %v1300_v60 = vpop.f32.mrf.mxu1 }
 0x698   : > { %v1421_v62 = vpop.f32.mrf.mxu1 }
 0x699   : > { %v1425_v63 = vpack.c.bf16 %v1421_v62, %v1421_v62 }
 0x69b   : > { %1945 = vmatmul.msk.bf16.vlgmr.msrb.gmra.mxu3 %vm1003_vm2, %v1425_v63 }
 0x6a0   : > { %v1423_v2 = vpop.f32.mrf.mxu1 }
 0x70e   : > { %v1320_v3 = vpop.f32.mrf.mxu3 }
 0x70f   : > { %v1324_v6 = vadd.f32 %v1320_v3, %v1199_v5 }
 0x716   : > { %v1322_v4 = vpop.f32.mrf.mxu3 }
 0x71e   : > { %v1443_v8 = vpop.f32.mrf.mxu3 }
 0x71f   : > { %v1447_v9 = vadd.f32 %v1443_v8, %v1324_v6 }
 0x721   : > { %v1452_v1 = vadd.f32 %v2100_v7, %v1447_v9 }
 0x723   : > { %v1453_v10 = vadd.f32 %v1452_v1, %v2409_v0 }
 0x725   : > { %v1454_v11 = vsel %vm976_vm3, %v1453_v10, 0.0 }
 0x726   : > { %1455 = vadd.xlane.f32.xlu2 %v1454_v11  ;;  %v1445_v12 = vpop.f32.mrf.mxu3 }
 0x799   : > { %v1456_v19 = vpop.xlane.xlu2 %1455 }
 0x79a   : > { %v1464_v20 = vmul.f32 %v2605_v18, %v1456_v19  ;;  %v2106_v19 = vld [vmem:[%s2760_s2] ss:$0 sm:$0xff] }
 0x79c   : > { %v1465_v21 = vsub.f32 %v1453_v10, %v1464_v20 }
 0x79e   : > { %v1466_v22 = vmul.f32 %v1465_v21, %v1465_v21 }
 0x7a0   : > { %v1467_v0 = vsel %vm976_vm3, %v1466_v22, 0.0 }
 0x7a1   : > { %1468 = vadd.xlane.f32.xlu0 %v1467_v0 }
 0x814   : > { %v1469_v25 = vpop.xlane.xlu0 %1468 }
 0x815   : > { %v1470_v26 = vmul.f32 %v1469_v25, %v2605_v18 }
 0x817   : > { %v1471_v27 = vadd.f32 1e-05, %v1470_v26 }
 0x819   : > { %2125 = vrsqrt.f32 %v1471_v27  ;;  %vm1478_vm8 = vweird.f32 %v1471_v27 }
 0x81f   : > { %v2126_v28 = vpop.eup %2125 }
 0x820   : > { %v1473_v29 = vmul.f32 %v2126_v28, %v1471_v27  ;;  %vm1479_vm7 = vweird.f32 %v2126_v28 }
 0x821   : > { %vm1480_vm9 = vmor %vm1478_vm8, %vm1479_vm7 }
 0x822   : > { %v1474_v30 = vmul.f32 %v2126_v28, %v1473_v29 }
 0x824   : > { %v1475_v31 = vmul.f32 0.5, %v1474_v30 }
 0x826   : > { %v1476_v32 = vsub.f32 1.5, %v1475_v31 }
 0x828   : > { %v1477_v33 = vmul.f32 %v2126_v28, %v1476_v32 }
 0x82a   : > { %v1481_v35 = vsel %vm1480_vm9, %v2126_v28, %v1477_v33 }
 0x82b   : > { %v1482_v37 = vmul.f32 %v1481_v35, %v1465_v21 }
 0x82d   : > { %v1487_v38 = vmul.f32 %v2101_v34, %v1482_v37 }
 0x82f   : > { %v1492_v39 = vadd.f32 %v2102_v36, %v1487_v38 }
 0x831   : > { %v1493_v40 = vpack.c.bf16 %v1492_v39, %v1492_v39 }
 0x833   : > { %1954 = vmatmul.msk.bf16.vlgmr.msra.gmra.mxu2 %vm976_vm3, %v1493_v40 }
 0x8b6   : > { %v1526_v46 = vpop.f32.mrf.mxu2 }
 0x8b7   : > { %v1527_v47 = vadd.f32 %v2103_v45, %v1526_v46 }
 0x8b9   : > { %v1531_v48 = vmul.f32 0.044715, %v1527_v47  ;;  %v1530_v55 = vmul.f32 0.5, %v1527_v47 }
 0x8bb   : > { %v1532_v49 = vmul.f32 %v1531_v48, %v1527_v47 }
 0x8bd   : > { %v1533_v50 = vmul.f32 %v1532_v49, %v1527_v47 }
 0x8be   : > { %v1528_v51 = vpop.f32.mrf.mxu2 }
 0x8bf   : > { %v1534_v52 = vadd.f32 %v1533_v50, %v1527_v47 }
 0x8c1   : > { %v1535_v53 = vmul.f32 0.7978846, %v1534_v52 }
 0x8c3   : > { %2127 = vtanh.f32 %v1535_v53 }
 0x8c9   : > { %v2128_v54 = vpop.eup %2127 }
 0x8ca   : > { %v1537_v56 = vadd.f32 1.0, %v2128_v54 }
 0x8cc   : > { %v1538_v57 = vmul.f32 %v1537_v56, %v1530_v55 }
 0x8ce   : > { %v1539_v58 = vpack.c.bf16 %v1538_v57, %v1538_v57 }
 0x8d0   : > { %1971 = vmatmul.msk.bf16.vlgmr.msra.gmra.mxu0 %vm1576_vm10, %v1539_v58 }
 0x94d   : > { %v1589_v60 = vpop.f32.mrf.mxu0 }
 0x94e   : > { %v1590_v62 = vadd.f32 %v2104_v59, %v1589_v60 }
 0x950   : > { %v1593_v63 = vadd.f32 %v1590_v62, %v1492_v39 }
 0x952   : > { %v1594_v2 = vsel %vm976_vm3, %v1593_v63, 0.0 }
 0x953   : > { %1595 = vadd.xlane.f32.xlu1 %v1594_v2 }
 0x955   : > { %v1591_v3 = vpop.f32.mrf.mxu0 }
 0x9c6   : > { %v1596_v4 = vpop.xlane.xlu1 %1595 }
 0x9c7   : > { %v1597_v5 = vmul.f32 %v1596_v4, %v2605_v18 }
 0x9c9   : > { %v1598_v6 = vsub.f32 %v1593_v63, %v1597_v5 }
 0x9cb   : > { %v1599_v7 = vmul.f32 %v1598_v6, %v1598_v6 }
 0x9cd   : > { %v1600_v8 = vsel %vm976_vm3, %v1599_v7, 0.0 }
 0x9ce   : > { %1601 = vadd.xlane.f32.xlu2 %v1600_v8 }
 0xa41   : > { %v1602_v9 = vpop.xlane.xlu2 %1601 }
 0xa42   : > { %v1603_v1 = vmul.f32 %v1602_v9, %v2605_v18 }
 0xa44   : > { %v1604_v10 = vadd.f32 1e-05, %v1603_v1 }
 0xa46   : > { %2129 = vrsqrt.f32 %v1604_v10  ;;  %vm1611_vm12 = vweird.f32 %v1604_v10 }
 0xa4c   : > { %v2130_v11 = vpop.eup %2129 }
 0xa4d   : > { %v1606_v12 = vmul.f32 %v2130_v11, %v1604_v10  ;;  %vm1612_vm11 = vweird.f32 %v2130_v11 }
 0xa4e   : > { %vm1613_vm13 = vmor %vm1611_vm12, %vm1612_vm11 }
 0xa4f   : > { %v1607_v13 = vmul.f32 %v2130_v11, %v1606_v12 }
 0xa51   : > { %v1608_v14 = vmul.f32 0.5, %v1607_v13 }
 0xa53   : > { %v1609_v15 = vsub.f32 1.5, %v1608_v14 }
 0xa55   : > { %v1610_v16 = vmul.f32 %v2130_v11, %v1609_v15 }
 0xa57   : > { %v1614_v17 = vsel %vm1613_vm13, %v2130_v11, %v1610_v16 }
 0xa58   : > { %v1615_v18 = vmul.f32 %v1614_v17, %v1598_v6 }
 0xa5a   : > { %v1620_v20 = vmul.f32 %v2105_v61, %v1615_v18 }
 0xa5c   : > { %v1625_v21 = vadd.f32 %v2106_v19, %v1620_v20 }
 0xa5e   : > { %1626 = vst.msk [vmem:[%s605_s22] sm:$0xff] %vm976_vm3, %v1625_v21 }
 0xa5f   : > { %2158 = shalt.err (!%p2155_p9)
}
 0xa60   : > { %2016 = dma.vmem_to_hbm [thread:$0]  (%p2374_p3), %s1643_s21, 128, %s1645_s26, %s1628_s23  }
 0xa61 PF: > { %s2762_s19 = sld [smem:[#allocation11_spill]] }
 0xa62   : > { %s2763_s22 = sld [smem:[#allocation7_spill]] }
 0xa67   : > { %p2022_p10 = scmp.ge.s32.totalorder %s2762_s19, 2 }
 0xa68   : > { %s1656_s2 = sand.u32 1, %s2763_s22  }
 0xa69   : > { %p2019_p11 = pnand %p2022_p10, %p2383_p8  ;;  %s1657_s18 = scalar_lea.sflag [#allocation5], %s1656_s2 }
 0xa6b   : > { %p2020_p12 = pneg %p2019_p11 }
 0xa6d   : > { %2192 = dma.done.wait (%p2020_p12), %s1657_s18, 128  }
 0xa6e   : > { %2194 = vsyncadd (%p2020_p12), %s1657_s18, 4294967168  ;;  %s31_s20 = sadd.s32 1, %s2762_s19   ;;  %s2765_s17 = sld [smem:[#allocation8_spill]] }
 0xa6f   : > { %p28_p13 = scmp.ge.s32.totalorder %s31_s20, 6   ;;  %s2766_s29 = sld [smem:[#allocation16_spill]] }
 0xa70   : > { %s2767_s30 = sld [smem:[#allocation9_spill]]  ;;  %s2771_s27 = smov %s2201_s28 }
 0xa71   : > { %s2768_s0 = sld [smem:[#allocation10_spill]]  ;;  %30 = sbr.rel (!%p28_p13) target bundleno = 13 (0xd), region = 167 }
 0xa72   : > { %s2769_s19 = sld [smem:[#allocation12_spill]] }
 0xa73   : > { %s2770_s1 = sld [smem:[#allocation14_spill]] }
 0xa74   : > { %s2772_s28 = smov %s2765_s17 }
 0xa76   :  { %1663 = vsyncpa [#allocation5], 1 }
 0xa77   :  { %1665 = vsyncpa [#allocation5 + $0x1], 1 }

</bundles_post_ra>
